<compile_context>
chip_gen: v5e
topology: v5e:2x2
jax: 0.10.0
libtpu: 0.0.40
codegen_flags: <defaults>
</compile_context>

<pallas_src>
import numpy as np
import jax
import jax.numpy as jnp
from jax.experimental import pallas as pl
from jax.experimental.pallas import tpu as pltpu

# ---- module hyper-parameters / sizes ----
T = 9
T1 = T - 1               # 8 : decoder steps == TCN in/out channels
DEC_H = 32               # decoder_num_hidden == encoder_num_hidden
ENC_H = DEC_H
INPUT_SIZE = 15          # hard-coded in the module
B = 2                    # batch
KS = 3                   # TCN kernel size
DILATIONS = (1, 2, 4, 8)
CHANS = (T1, ENC_H, ENC_H, ENC_H, T1)   # TCN channel chain

LANES = 128
S0_OFF = 0               # sample-0 lane offset in the packed TCN layout
S1_OFF = 64              # sample-1 lane offset (gap 49 >= max causal shift 16)
Y0_LANE = 32             # y_prev lanes; 32+16=48<64 and 96+16=112>79, so they can
Y1_LANE = 96             # never roll into a valid window


def _round8(n):
    return -(-n // 8) * 8


def _make_w_layout():
    """Static layout of the packed matrix rows: name -> (row_offset, rows, cols)."""
    entries = []
    for li in range(4):
        cin, cout = CHANS[li], CHANS[li + 1]
        entries.append((f"b{li}_w1", cout, 3 * cin + 1))    # [W_k0|W_k1|W_k2|bias]
        entries.append((f"b{li}_w2", cout, 3 * cout + 1))
        if cin != cout:
            entries.append((f"b{li}_wd", cout, cin + 1))    # [Wd|bias]
    entries.append(("w_hh", DEC_H, 4 * DEC_H))              # LSTM hidden weights, transposed
    layout, off = {}, 0
    for name, rows, cols in entries:
        layout[name] = (off, rows, cols)
        off += _round8(rows)
    return layout, _round8(off)


W_LAYOUT, VROW = _make_w_layout()   # 280 matrix rows
N_VROWS = 8
PSLAB_ROWS = VROW + N_VROWS         # 288 rows x 128 lanes (~147 KB)

# vector-row indices (relative to VROW)
VR_VSCORE = 0    # folded attention score vector  attn_W2 @ attn_W1[:, 2H:]   lanes [0:15]
VR_WFCCTX = 1    # fc weight, context part                                    lanes [0:15]
VR_WIH = 2       # LSTM w_ih column                                           lanes [0:4H]
VR_WIHY = 3      # fc_w_y * w_ih                                              lanes [0:4H]
VR_BEFF = 4      # b_ih + b_hh + fc_b * w_ih                                  lanes [0:4H]
VR_WF = 5        # fc_final: [wf_d (32) | wf_ctx (15) | bias (1)]             lanes [0:48]
VR_MASK = 6      # valid-lane mask of the packed TCN layout
# VR 7 unused


# ----------------------------------------------------------------------------
# Pallas kernel: whole batch in one invocation, everything resident in VMEM.
# ----------------------------------------------------------------------------
def decoder_kernel(x_ref, w_ref, o_ref):
    f32 = jnp.float32
    L = INPUT_SIZE
    H = DEC_H

    def wget(name):
        r0, rows, cols = W_LAYOUT[name]
        return w_ref[r0:r0 + rows, 0:cols]

    def vrow(i, c0=0, c1=LANES):
        r = VROW + i
        return w_ref[r:r + 1, c0:c1]

    def rshift(x, s):
        # Causal right-shift by s lanes of the packed (C,128) activation.  The
        # pad/gap lanes of x are zero and the gap (>=49) exceeds the largest
        # shift, so the rotate's wrap-around only brings zeros into the two
        # valid windows (XLU op, off the VPU/store path).
        return pltpu.roll(x, s, axis=1)

    def conv(x, wb, dil, cin, drop_first):
        # Fused dilated causal Conv1d (Conv1d + Chomp) for BOTH samples: one matmul.
        # x: (cin,128); wb: (cout, 3*cin+1) = [W_k0 | W_k1 | W_k2 | bias]
        b = wb[:, 3 * cin:3 * cin + 1]
        if drop_first:
            # shift 2*dil >= L: that tap is identically zero inside each sample.
            W = wb[:, cin:3 * cin]
            xs = jnp.concatenate([rshift(x, dil), x], axis=0)             # (2cin,128)
        else:
            W = wb[:, :3 * cin]
            xs = jnp.concatenate([rshift(x, 2 * dil), rshift(x, dil), x], axis=0)
        return jnp.dot(W, xs, preferred_element_type=f32) + b

    mrow = vrow(VR_MASK)                                   # (1,128) valid-lane mask

    def tblock(x, li, dil, cin, cout, has_down):
        drop = (2 * dil) >= L
        h = jnp.maximum(conv(x, wget(f"b{li}_w1"), dil, cin, drop), 0.0) * mrow
        h = jnp.maximum(conv(h, wget(f"b{li}_w2"), dil, cout, drop), 0.0)
        # TODO(synk): TCN dropout (p=0.45) treated as eval-mode identity.
        if has_down:
            wdb = wget(f"b{li}_wd")
            res = jnp.dot(wdb[:, :cin], x, preferred_element_type=f32) + wdb[:, cin:cin + 1]
        else:
            res = x
        # re-zero pad/gap lanes so bias garbage cannot roll into the other sample
        return jnp.maximum(h + res, 0.0) * mrow

    # ---- TCN encoder: both samples at once, packed along the 128-lane axis ----
    xp = x_ref[...]                                        # (T1,128)
    e = xp
    for li, dil in enumerate(DILATIONS):
        cin, cout = CHANS[li], CHANS[li + 1]
        e = tblock(e, li, dil, cin, cout, cin != cout)
    # e: (T1,128); encod for sample b lives at lanes [b*64 : b*64+L]

    # ---- attention + context: loop-invariant, hoisted out of the recurrence ----
    # attn_layer = Linear(2H+L,H) -> Linear(H,1) with no nonlinearity in between,
    # so the d/c term and both biases are constant across the T-1 rows and cancel
    # exactly in softmax.  W2 @ W1[:, 2H:] is folded host-side into v_score.
    v_score = vrow(VR_VSCORE, 0, L)                        # (1,L)
    ctxs = []
    for off in (S0_OFF, S1_OFF):
        enc_b = e[:, off:off + L]                          # (T1,L)
        s = jnp.sum(enc_b * v_score, axis=1, keepdims=True)        # (T1,1)
        s = s - jnp.max(s, axis=0, keepdims=True)
        p = jnp.exp(s)
        beta = p / jnp.sum(p, axis=0, keepdims=True)       # exact softmax (one-time)
        ctxs.append(jnp.sum(beta * enc_b, axis=0, keepdims=True))  # (1,L)
    context = jnp.concatenate(ctxs, axis=0)                # (B,L)

    # ---- fold fc into the LSTM input path; precompute per-step gate bias ----
    w_ih = vrow(VR_WIH)                                    # (1,4H)
    w_ih_y = vrow(VR_WIHY)                                 # (1,4H) = fc_w_y * w_ih
    b_eff = vrow(VR_BEFF)                                  # (1,4H) = b_ih+b_hh+fc_b*w_ih
    wfc_ctx = vrow(VR_WFCCTX, 0, L)                        # (1,L)
    ctx_term = jnp.sum(context * wfc_ctx, axis=1, keepdims=True)   # (B,1)
    gbias = ctx_term * w_ih + b_eff                        # (B,4H)
    y_tb = jnp.concatenate([xp[:, Y0_LANE:Y0_LANE + 1],
                            xp[:, Y1_LANE:Y1_LANE + 1]], axis=1)   # (T1,B)
    gates_base = gbias[None, :, :] + y_tb[:, :, None] * w_ih_y[None, :, :]   # (T1,B,4H)

    # ---- recurrent LSTM loop: 1 matmul + 2 full-width EUP passes per step ----
    Whh = wget("w_hh")                                     # (H,4H)  columns i|f|g|o
    d = jnp.zeros((B, H), f32)
    c = jnp.zeros((B, H), f32)
    for t in range(T1):
        if t == 0:
            gates = gates_base[0]                          # d == 0 -> skip the matmul
        else:
            gates = jnp.dot(d, Whh, preferred_element_type=f32) + gates_base[t]
        sig = jax.nn.sigmoid(gates)                        # full 128-lane EUP pass
        th = jnp.tanh(gates)                               # full 128-lane EUP pass
        gi = sig[:, 0:H]
        gf = sig[:, H:2 * H]
        go = sig[:, 3 * H:4 * H]
        gg = th[:, 2 * H:3 * H]
        c = gi * gg if t == 0 else gf * c + gi * gg
        d = go * jnp.tanh(c)

    # ---- fc_final ----
    wf_d = vrow(VR_WF, 0, H)                               # (1,H)
    wf_ctx = vrow(VR_WF, H, H + L)                         # (1,L)
    bf = vrow(VR_WF, H + L, H + L + 1)                     # (1,1)
    y_pred = (jnp.sum(d * wf_d, axis=1, keepdims=True)
              + jnp.sum(context * wf_ctx, axis=1, keepdims=True) + bf)   # (B,1)
    o_ref[...] = jnp.broadcast_to(y_pred, (B, LANES))      # lane-dense store


# ----------------------------------------------------------------------------
# Wrapper
# ----------------------------------------------------------------------------
def decoder_forward(X, yprev, pslab):
    assert X.shape == (B, T1, INPUT_SIZE) and yprev.shape == (B, T1)
    # layout plumbing: one lane-dense data slab (2 input DMAs total incl. params)
    xpack = jnp.zeros((T1, LANES), jnp.float32)
    xpack = xpack.at[:, S0_OFF:S0_OFF + INPUT_SIZE].set(X[0])
    xpack = xpack.at[:, S1_OFF:S1_OFF + INPUT_SIZE].set(X[1])
    xpack = xpack.at[:, Y0_LANE].set(yprev[0])
    xpack = xpack.at[:, Y1_LANE].set(yprev[1])

    out = pl.pallas_call(
        decoder_kernel,
        out_shape=jax.ShapeDtypeStruct((B, LANES), jnp.float32),
        grid=(1,),
        in_specs=[
            pl.BlockSpec((T1, LANES), lambda i: (0, 0)),            # packed X (+ y_prev)
            pl.BlockSpec((PSLAB_ROWS, LANES), lambda i: (0, 0)),    # packed parameters
        ],
        out_specs=pl.BlockSpec((B, LANES), lambda i: (0, 0)),
        compiler_params=pltpu.CompilerParams(dimension_semantics=("arbitrary",)),
    )(xpack, pslab)
    return out[:, :1]


# ----------------------------------------------------------------------------
# Parameter construction (deterministic, synthetic, PyTorch-natural forms)
# ----------------------------------------------------------------------------
def _uniform(key, shape, scale=0.1):
    return jax.random.uniform(key, shape, jnp.float32, minval=-scale, maxval=scale)


def make_params(key):
    keys = iter(jax.random.split(key, 64))
    p = {}
    tcn = []
    for li in range(4):
        cin, cout = CHANS[li], CHANS[li + 1]
        blk = {
            "w1": _uniform(next(keys), (KS, cout, cin)),
            "b1": _uniform(next(keys), (cout,)),
            "w2": _uniform(next(keys), (KS, cout, cout)),
            "b2": _uniform(next(keys), (cout,)),
        }
        if cin != cout:     # 1x1 downsample conv on residual path
            blk["wd"] = _uniform(next(keys), (cout, cin))
            blk["bd"] = _uniform(next(keys), (cout,))
        tcn.append(blk)
    p["tcn"] = tcn
    p["attn_W1"] = _uniform(next(keys), (DEC_H, 2 * DEC_H + INPUT_SIZE))
    p["attn_b1"] = _uniform(next(keys), (DEC_H,))
    p["attn_W2"] = _uniform(next(keys), (1, ENC_H))
    p["attn_b2"] = _uniform(next(keys), (1,))
    p["fc_W"] = jax.random.normal(next(keys), (1, INPUT_SIZE + 1), jnp.float32) * 0.1
    p["fc_b"] = _uniform(next(keys), (1,))
    p["lstm_w_ih"] = _uniform(next(keys), (4 * DEC_H, 1))
    p["lstm_w_hh"] = _uniform(next(keys), (4 * DEC_H, DEC_H))
    p["lstm_b_ih"] = _uniform(next(keys), (4 * DEC_H,))
    p["lstm_b_hh"] = _uniform(next(keys), (4 * DEC_H,))
    p["fcf_W"] = _uniform(next(keys), (1, DEC_H + INPUT_SIZE))
    p["fcf_b"] = _uniform(next(keys), (1,))
    return p


def pack_params(p):
    """Pack all parameters into a single lane-dense slab consumed by the kernel."""
    P = np.zeros((PSLAB_ROWS, 128), np.float32)

    def put(name, arr):
        r0, rows, cols = W_LAYOUT[name]
        a = np.asarray(arr, np.float32)
        assert a.shape == (rows, cols), (name, a.shape, rows, cols)
        P[r0:r0 + rows, :cols] = a

    def wcat_b(w, b):   # (KS,Cout,Cin),(Cout,) -> (Cout, KS*Cin + 1)
        wc = np.concatenate([np.asarray(w[k]) for k in range(KS)], axis=1)
        return np.concatenate([wc, np.asarray(b)[:, None]], axis=1)

    for li, blk in enumerate(p["tcn"]):
        put(f"b{li}_w1", wcat_b(blk["w1"], blk["b1"]))
        put(f"b{li}_w2", wcat_b(blk["w2"], blk["b2"]))
        if "wd" in blk:
            put(f"b{li}_wd",
                np.concatenate([np.asarray(blk["wd"]), np.asarray(blk["bd"])[:, None]], axis=1))
    put("w_hh", np.asarray(p["lstm_w_hh"]).T)

    # host-side folds (parameter-only; done once)
    W1 = np.asarray(p["attn_W1"], np.float32)
    W2 = np.asarray(p["attn_W2"], np.float32)
    v_score = (W2 @ W1[:, 2 * DEC_H:])[0]                  # (L,)  biases/d/c cancel in softmax
    fcW = np.asarray(p["fc_W"], np.float32)[0]             # (L+1,)
    bfc = float(np.asarray(p["fc_b"])[0])
    w_ih = np.asarray(p["lstm_w_ih"], np.float32)[:, 0]    # (4H,)
    b_eff = (np.asarray(p["lstm_b_ih"], np.float32)
             + np.asarray(p["lstm_b_hh"], np.float32) + bfc * w_ih)
    fcfW = np.asarray(p["fcf_W"], np.float32)[0]
    bf = float(np.asarray(p["fcf_b"])[0])

    r = VROW
    P[r + VR_VSCORE, :INPUT_SIZE] = v_score
    P[r + VR_WFCCTX, :INPUT_SIZE] = fcW[:INPUT_SIZE]
    P[r + VR_WIH, :] = w_ih
    P[r + VR_WIHY, :] = fcW[INPUT_SIZE] * w_ih
    P[r + VR_BEFF, :] = b_eff
    P[r + VR_WF, :DEC_H] = fcfW[:DEC_H]
    P[r + VR_WF, DEC_H:DEC_H + INPUT_SIZE] = fcfW[DEC_H:]
    P[r + VR_WF, DEC_H + INPUT_SIZE] = bf
    P[r + VR_MASK, S0_OFF:S0_OFF + INPUT_SIZE] = 1.0
    P[r + VR_MASK, S1_OFF:S1_OFF + INPUT_SIZE] = 1.0
    return jnp.asarray(P)


# ----------------------------------------------------------------------------
# Pure-JAX reference (direct transcription of the PyTorch forward) for checking.
# ----------------------------------------------------------------------------
def reference_forward(X, yprev, p):
    H = DEC_H

    def shift_ref(x, s):
        Lx = x.shape[-1]
        if s == 0:
            return x
        if s >= Lx:
            return jnp.zeros_like(x)
        return jnp.concatenate(
            [jnp.zeros(x.shape[:-1] + (s,), x.dtype), x[..., :Lx - s]], axis=-1)

    def conv(x, w, b, dil):
        out = b[:, None]
        for k in range(KS):
            out = out + w[k] @ shift_ref(x, dil * (KS - 1 - k))
        return out

    def block(x, blk, dil):
        h = jnp.maximum(conv(x, blk["w1"], blk["b1"], dil), 0.0)
        h = jnp.maximum(conv(h, blk["w2"], blk["b2"], dil), 0.0)
        res = blk["wd"] @ x + blk["bd"][:, None] if "wd" in blk else x
        return jnp.maximum(h + res, 0.0)

    W1, b1a = p["attn_W1"], p["attn_b1"]
    W2, b2a = p["attn_W2"], p["attn_b2"]
    Wfc, bfc = p["fc_W"], p["fc_b"]
    w_ih, w_hh = p["lstm_w_ih"], p["lstm_w_hh"]
    b_l = p["lstm_b_ih"] + p["lstm_b_hh"]
    Wf, bfv = p["fcf_W"], p["fcf_b"]

    outs = []
    for bi in range(X.shape[0]):
        e = X[bi]
        for li, dil in enumerate(DILATIONS):
            e = block(e, p["tcn"][li], dil)
        encod = e                                                   # (T1, 15)
        d = jnp.zeros((1, H), jnp.float32)
        c = jnp.zeros((1, H), jnp.float32)
        context = jnp.zeros((1, INPUT_SIZE), jnp.float32)
        for t in range(T1):
            rep_d = jnp.broadcast_to(d, (T1, H))
            rep_c = jnp.broadcast_to(c, (T1, H))
            xcat = jnp.concatenate([rep_d, rep_c, encod], axis=1)   # (T1, 2H+15)
            hidden = xcat @ W1.T + b1a
            scores = hidden @ W2.T + b2a                            # (T1, 1)
            beta = jax.nn.softmax(scores[:, 0])                     # (T1,)
            context = (beta[:, None] * encod).sum(0, keepdims=True) # (1, 15)
            ycat = jnp.concatenate([context, yprev[bi, t].reshape(1, 1)], axis=1)
            y_tilde = ycat @ Wfc.T + bfc                            # (1, 1)
            gates = y_tilde @ w_ih.T + d @ w_hh.T + b_l             # (1, 4H)
            gi = jax.nn.sigmoid(gates[:, :H])
            gf = jax.nn.sigmoid(gates[:, H:2 * H])
            gg = jnp.tanh(gates[:, 2 * H:3 * H])
            go = jax.nn.sigmoid(gates[:, 3 * H:])
            c = gf * c + gi * gg
            d = go * jnp.tanh(c)
        outs.append(jnp.concatenate([d, context], axis=1) @ Wf.T + bfv)
    return jnp.concatenate(outs, axis=0)


if __name__ == "__main__":
    key = jax.random.PRNGKey(0)
    kx, ky, kp = jax.random.split(key, 3)
    X_tilde = jax.random.normal(kx, (B, T1, INPUT_SIZE), jnp.float32)
    y_prev = jax.random.normal(ky, (B, T1), jnp.float32)
    params = make_params(kp)
    pslab = pack_params(params)

    y_pred = decoder_forward(X_tilde, y_prev, pslab)
    y_pred = jax.block_until_ready(y_pred)
    assert y_pred.shape == (B, 1)

    y_ref = reference_forward(X_tilde, y_prev, params)
    np.testing.assert_allclose(np.asarray(y_pred), np.asarray(y_ref), rtol=2e-2, atol=2e-2)
    print("KERNEL_OK")
</pallas_src>

<mosaic_0001>
module attributes {stable_mosaic.version = 11 : i64} {
  func.func @decoder_kernel(%arg0: i32, %arg1: memref<8x128xf32, #tpu.memory_space<vmem>>, %arg2: memref<288x128xf32, #tpu.memory_space<vmem>>, %arg3: memref<2x128xf32, #tpu.memory_space<vmem>>) attributes {dimension_semantics = [#tpu.dimension_semantics<arbitrary>], iteration_bounds = array<i64: 1>, scalar_prefetch = 0 : i64, scratch_operands = 0 : i64, tpu.core_type = #tpu.core_type<tc>, window_params = [{pipeline_mode = #tpu.pipeline_mode<synchronous>, transform_indices = @transform_0, window_bounds = array<i64: 8, 128>}, {pipeline_mode = #tpu.pipeline_mode<synchronous>, transform_indices = @transform_1, window_bounds = array<i64: 288, 128>}, {pipeline_mode = #tpu.pipeline_mode<synchronous>, transform_indices = @transform_2, window_bounds = array<i64: 2, 128>}]} {
    %c286 = arith.constant 286 : index
    %c0 = arith.constant 0 : index
    %0 = vector.load %arg2[%c286, %c0] : memref<288x128xf32, #tpu.memory_space<vmem>>, vector<1x128xf32>
    %c0_0 = arith.constant 0 : index
    %c0_1 = arith.constant 0 : index
    %1 = vector.load %arg1[%c0_0, %c0_1] : memref<8x128xf32, #tpu.memory_space<vmem>>, vector<8x128xf32>
    %c0_2 = arith.constant 0 : index
    %c0_3 = arith.constant 0 : index
    %2 = vector.load %arg2[%c0_2, %c0_3] : memref<288x128xf32, #tpu.memory_space<vmem>>, vector<32x25xf32>
    %3 = vector.extract_strided_slice %2 {offsets = [0, 24], sizes = [32, 1], strides = [1, 1]} : vector<32x25xf32> to vector<32x1xf32>
    %4 = vector.extract_strided_slice %2 {offsets = [0, 0], sizes = [32, 24], strides = [1, 1]} : vector<32x25xf32> to vector<32x24xf32>
    %c2_i32 = arith.constant 2 : i32
    %5 = tpu.dynamic_rotate %1 by %c2_i32 dim 1 : vector<8x128xf32>, i32 -> vector<8x128xf32>
    %c1_i32 = arith.constant 1 : i32
    %6 = tpu.dynamic_rotate %1 by %c1_i32 dim 1 : vector<8x128xf32>, i32 -> vector<8x128xf32>
    %7 = tpu.concatenate %5, %6, %1 in 0 : vector<8x128xf32>, vector<8x128xf32>, vector<8x128xf32> -> vector<24x128xf32>
    %cst = arith.constant dense<0.000000e+00> : vector<32x128xf32>
    %8 = tpu.matmul %4, %7, %cst {dimension_numbers = #tpu.dot_dimension_numbers<[1], [0], [0], [1], [0, 0, 1, 1], [], []>} : vector<32x24xf32>, vector<24x128xf32>, vector<32x128xf32> -> vector<32x128xf32>
    %9 = vector.broadcast %3 : vector<32x1xf32> to vector<32x128xf32>
    %10 = arith.addf %8, %9 : vector<32x128xf32>
    %cst_4 = arith.constant 0.000000e+00 : f32
    %11 = vector.broadcast %cst_4 : f32 to vector<32x128xf32>
    %12 = arith.maximumf %10, %11 : vector<32x128xf32>
    %13 = vector.broadcast %0 : vector<1x128xf32> to vector<32x128xf32>
    %14 = arith.mulf %12, %13 : vector<32x128xf32>
    %c32 = arith.constant 32 : index
    %c0_5 = arith.constant 0 : index
    %15 = vector.load %arg2[%c32, %c0_5] : memref<288x128xf32, #tpu.memory_space<vmem>>, vector<32x97xf32>
    %16 = vector.extract_strided_slice %15 {offsets = [0, 96], sizes = [32, 1], strides = [1, 1]} : vector<32x97xf32> to vector<32x1xf32>
    %17 = vector.extract_strided_slice %15 {offsets = [0, 0], sizes = [32, 96], strides = [1, 1]} : vector<32x97xf32> to vector<32x96xf32>
    %c2_i32_6 = arith.constant 2 : i32
    %18 = tpu.dynamic_rotate %14 by %c2_i32_6 dim 1 : vector<32x128xf32>, i32 -> vector<32x128xf32>
    %c1_i32_7 = arith.constant 1 : i32
    %19 = tpu.dynamic_rotate %14 by %c1_i32_7 dim 1 : vector<32x128xf32>, i32 -> vector<32x128xf32>
    %20 = tpu.concatenate %18, %19, %14 in 0 : vector<32x128xf32>, vector<32x128xf32>, vector<32x128xf32> -> vector<96x128xf32>
    %cst_8 = arith.constant dense<0.000000e+00> : vector<32x128xf32>
    %21 = tpu.matmul %17, %20, %cst_8 {dimension_numbers = #tpu.dot_dimension_numbers<[1], [0], [0], [1], [0, 0, 1, 1], [], []>} : vector<32x96xf32>, vector<96x128xf32>, vector<32x128xf32> -> vector<32x128xf32>
    %22 = vector.broadcast %16 : vector<32x1xf32> to vector<32x128xf32>
    %23 = arith.addf %21, %22 : vector<32x128xf32>
    %cst_9 = arith.constant 0.000000e+00 : f32
    %24 = vector.broadcast %cst_9 : f32 to vector<32x128xf32>
    %25 = arith.maximumf %23, %24 : vector<32x128xf32>
    %c64 = arith.constant 64 : index
    %c0_10 = arith.constant 0 : index
    %26 = vector.load %arg2[%c64, %c0_10] : memref<288x128xf32, #tpu.memory_space<vmem>>, vector<32x9xf32>
    %27 = vector.extract_strided_slice %26 {offsets = [0, 0], sizes = [32, 8], strides = [1, 1]} : vector<32x9xf32> to vector<32x8xf32>
    %cst_11 = arith.constant dense<0.000000e+00> : vector<32x128xf32>
    %28 = tpu.matmul %27, %1, %cst_11 {dimension_numbers = #tpu.dot_dimension_numbers<[1], [0], [0], [1], [0, 0, 1, 1], [], []>} : vector<32x8xf32>, vector<8x128xf32>, vector<32x128xf32> -> vector<32x128xf32>
    %29 = vector.extract_strided_slice %26 {offsets = [0, 8], sizes = [32, 1], strides = [1, 1]} : vector<32x9xf32> to vector<32x1xf32>
    %30 = vector.broadcast %29 : vector<32x1xf32> to vector<32x128xf32>
    %31 = arith.addf %28, %30 : vector<32x128xf32>
    %32 = arith.addf %25, %31 : vector<32x128xf32>
    %cst_12 = arith.constant 0.000000e+00 : f32
    %33 = vector.broadcast %cst_12 : f32 to vector<32x128xf32>
    %34 = arith.maximumf %32, %33 : vector<32x128xf32>
    %35 = vector.broadcast %0 : vector<1x128xf32> to vector<32x128xf32>
    %36 = arith.mulf %34, %35 : vector<32x128xf32>
    %c96 = arith.constant 96 : index
    %c0_13 = arith.constant 0 : index
    %37 = vector.load %arg2[%c96, %c0_13] : memref<288x128xf32, #tpu.memory_space<vmem>>, vector<32x97xf32>
    %38 = vector.extract_strided_slice %37 {offsets = [0, 96], sizes = [32, 1], strides = [1, 1]} : vector<32x97xf32> to vector<32x1xf32>
    %39 = vector.extract_strided_slice %37 {offsets = [0, 0], sizes = [32, 96], strides = [1, 1]} : vector<32x97xf32> to vector<32x96xf32>
    %c4_i32 = arith.constant 4 : i32
    %40 = tpu.dynamic_rotate %36 by %c4_i32 dim 1 : vector<32x128xf32>, i32 -> vector<32x128xf32>
    %c2_i32_14 = arith.constant 2 : i32
    %41 = tpu.dynamic_rotate %36 by %c2_i32_14 dim 1 : vector<32x128xf32>, i32 -> vector<32x128xf32>
    %42 = tpu.concatenate %40, %41, %36 in 0 : vector<32x128xf32>, vector<32x128xf32>, vector<32x128xf32> -> vector<96x128xf32>
    %cst_15 = arith.constant dense<0.000000e+00> : vector<32x128xf32>
    %43 = tpu.matmul %39, %42, %cst_15 {dimension_numbers = #tpu.dot_dimension_numbers<[1], [0], [0], [1], [0, 0, 1, 1], [], []>} : vector<32x96xf32>, vector<96x128xf32>, vector<32x128xf32> -> vector<32x128xf32>
    %44 = vector.broadcast %38 : vector<32x1xf32> to vector<32x128xf32>
    %45 = arith.addf %43, %44 : vector<32x128xf32>
    %cst_16 = arith.constant 0.000000e+00 : f32
    %46 = vector.broadcast %cst_16 : f32 to vector<32x128xf32>
    %47 = arith.maximumf %45, %46 : vector<32x128xf32>
    %48 = vector.broadcast %0 : vector<1x128xf32> to vector<32x128xf32>
    %49 = arith.mulf %47, %48 : vector<32x128xf32>
    %c128 = arith.constant 128 : index
    %c0_17 = arith.constant 0 : index
    %50 = vector.load %arg2[%c128, %c0_17] : memref<288x128xf32, #tpu.memory_space<vmem>>, vector<32x97xf32>
    %51 = vector.extract_strided_slice %50 {offsets = [0, 96], sizes = [32, 1], strides = [1, 1]} : vector<32x97xf32> to vector<32x1xf32>
    %52 = vector.extract_strided_slice %50 {offsets = [0, 0], sizes = [32, 96], strides = [1, 1]} : vector<32x97xf32> to vector<32x96xf32>
    %c4_i32_18 = arith.constant 4 : i32
    %53 = tpu.dynamic_rotate %49 by %c4_i32_18 dim 1 : vector<32x128xf32>, i32 -> vector<32x128xf32>
    %c2_i32_19 = arith.constant 2 : i32
    %54 = tpu.dynamic_rotate %49 by %c2_i32_19 dim 1 : vector<32x128xf32>, i32 -> vector<32x128xf32>
    %55 = tpu.concatenate %53, %54, %49 in 0 : vector<32x128xf32>, vector<32x128xf32>, vector<32x128xf32> -> vector<96x128xf32>
    %cst_20 = arith.constant dense<0.000000e+00> : vector<32x128xf32>
    %56 = tpu.matmul %52, %55, %cst_20 {dimension_numbers = #tpu.dot_dimension_numbers<[1], [0], [0], [1], [0, 0, 1, 1], [], []>} : vector<32x96xf32>, vector<96x128xf32>, vector<32x128xf32> -> vector<32x128xf32>
    %57 = vector.broadcast %51 : vector<32x1xf32> to vector<32x128xf32>
    %58 = arith.addf %56, %57 : vector<32x128xf32>
    %cst_21 = arith.constant 0.000000e+00 : f32
    %59 = vector.broadcast %cst_21 : f32 to vector<32x128xf32>
    %60 = arith.maximumf %58, %59 : vector<32x128xf32>
    %61 = arith.addf %60, %36 : vector<32x128xf32>
    %cst_22 = arith.constant 0.000000e+00 : f32
    %62 = vector.broadcast %cst_22 : f32 to vector<32x128xf32>
    %63 = arith.maximumf %61, %62 : vector<32x128xf32>
    %64 = vector.broadcast %0 : vector<1x128xf32> to vector<32x128xf32>
    %65 = arith.mulf %63, %64 : vector<32x128xf32>
    %c160 = arith.constant 160 : index
    %c0_23 = arith.constant 0 : index
    %66 = vector.load %arg2[%c160, %c0_23] : memref<288x128xf32, #tpu.memory_space<vmem>>, vector<32x97xf32>
    %67 = vector.extract_strided_slice %66 {offsets = [0, 96], sizes = [32, 1], strides = [1, 1]} : vector<32x97xf32> to vector<32x1xf32>
    %68 = vector.extract_strided_slice %66 {offsets = [0, 0], sizes = [32, 96], strides = [1, 1]} : vector<32x97xf32> to vector<32x96xf32>
    %c8_i32 = arith.constant 8 : i32
    %69 = tpu.dynamic_rotate %65 by %c8_i32 dim 1 : vector<32x128xf32>, i32 -> vector<32x128xf32>
    %c4_i32_24 = arith.constant 4 : i32
    %70 = tpu.dynamic_rotate %65 by %c4_i32_24 dim 1 : vector<32x128xf32>, i32 -> vector<32x128xf32>
    %71 = tpu.concatenate %69, %70, %65 in 0 : vector<32x128xf32>, vector<32x128xf32>, vector<32x128xf32> -> vector<96x128xf32>
    %cst_25 = arith.constant dense<0.000000e+00> : vector<32x128xf32>
    %72 = tpu.matmul %68, %71, %cst_25 {dimension_numbers = #tpu.dot_dimension_numbers<[1], [0], [0], [1], [0, 0, 1, 1], [], []>} : vector<32x96xf32>, vector<96x128xf32>, vector<32x128xf32> -> vector<32x128xf32>
    %73 = vector.broadcast %67 : vector<32x1xf32> to vector<32x128xf32>
    %74 = arith.addf %72, %73 : vector<32x128xf32>
    %cst_26 = arith.constant 0.000000e+00 : f32
    %75 = vector.broadcast %cst_26 : f32 to vector<32x128xf32>
    %76 = arith.maximumf %74, %75 : vector<32x128xf32>
    %77 = vector.broadcast %0 : vector<1x128xf32> to vector<32x128xf32>
    %78 = arith.mulf %76, %77 : vector<32x128xf32>
    %c192 = arith.constant 192 : index
    %c0_27 = arith.constant 0 : index
    %79 = vector.load %arg2[%c192, %c0_27] : memref<288x128xf32, #tpu.memory_space<vmem>>, vector<32x97xf32>
    %80 = vector.extract_strided_slice %79 {offsets = [0, 96], sizes = [32, 1], strides = [1, 1]} : vector<32x97xf32> to vector<32x1xf32>
    %81 = vector.extract_strided_slice %79 {offsets = [0, 0], sizes = [32, 96], strides = [1, 1]} : vector<32x97xf32> to vector<32x96xf32>
    %c8_i32_28 = arith.constant 8 : i32
    %82 = tpu.dynamic_rotate %78 by %c8_i32_28 dim 1 : vector<32x128xf32>, i32 -> vector<32x128xf32>
    %c4_i32_29 = arith.constant 4 : i32
    %83 = tpu.dynamic_rotate %78 by %c4_i32_29 dim 1 : vector<32x128xf32>, i32 -> vector<32x128xf32>
    %84 = tpu.concatenate %82, %83, %78 in 0 : vector<32x128xf32>, vector<32x128xf32>, vector<32x128xf32> -> vector<96x128xf32>
    %cst_30 = arith.constant dense<0.000000e+00> : vector<32x128xf32>
    %85 = tpu.matmul %81, %84, %cst_30 {dimension_numbers = #tpu.dot_dimension_numbers<[1], [0], [0], [1], [0, 0, 1, 1], [], []>} : vector<32x96xf32>, vector<96x128xf32>, vector<32x128xf32> -> vector<32x128xf32>
    %86 = vector.broadcast %80 : vector<32x1xf32> to vector<32x128xf32>
    %87 = arith.addf %85, %86 : vector<32x128xf32>
    %cst_31 = arith.constant 0.000000e+00 : f32
    %88 = vector.broadcast %cst_31 : f32 to vector<32x128xf32>
    %89 = arith.maximumf %87, %88 : vector<32x128xf32>
    %90 = arith.addf %89, %65 : vector<32x128xf32>
    %cst_32 = arith.constant 0.000000e+00 : f32
    %91 = vector.broadcast %cst_32 : f32 to vector<32x128xf32>
    %92 = arith.maximumf %90, %91 : vector<32x128xf32>
    %93 = vector.broadcast %0 : vector<1x128xf32> to vector<32x128xf32>
    %94 = arith.mulf %92, %93 : vector<32x128xf32>
    %c224 = arith.constant 224 : index
    %c0_33 = arith.constant 0 : index
    %95 = vector.load %arg2[%c224, %c0_33] : memref<288x128xf32, #tpu.memory_space<vmem>>, vector<8x97xf32>
    %96 = vector.extract_strided_slice %95 {offsets = [0, 96], sizes = [8, 1], strides = [1, 1]} : vector<8x97xf32> to vector<8x1xf32>
    %97 = vector.extract_strided_slice %95 {offsets = [0, 32], sizes = [8, 64], strides = [1, 1]} : vector<8x97xf32> to vector<8x64xf32>
    %c8_i32_34 = arith.constant 8 : i32
    %98 = tpu.dynamic_rotate %94 by %c8_i32_34 dim 1 : vector<32x128xf32>, i32 -> vector<32x128xf32>
    %99 = tpu.concatenate %98, %94 in 0 : vector<32x128xf32>, vector<32x128xf32> -> vector<64x128xf32>
    %cst_35 = arith.constant dense<0.000000e+00> : vector<8x128xf32>
    %100 = tpu.matmul %97, %99, %cst_35 {dimension_numbers = #tpu.dot_dimension_numbers<[1], [0], [0], [1], [0, 0, 1, 1], [], []>} : vector<8x64xf32>, vector<64x128xf32>, vector<8x128xf32> -> vector<8x128xf32>
    %101 = vector.broadcast %96 : vector<8x1xf32> to vector<8x128xf32>
    %102 = arith.addf %100, %101 : vector<8x128xf32>
    %cst_36 = arith.constant 0.000000e+00 : f32
    %103 = vector.broadcast %cst_36 : f32 to vector<8x128xf32>
    %104 = arith.maximumf %102, %103 : vector<8x128xf32>
    %105 = vector.broadcast %0 : vector<1x128xf32> to vector<8x128xf32>
    %106 = arith.mulf %104, %105 : vector<8x128xf32>
    %c232 = arith.constant 232 : index
    %c0_37 = arith.constant 0 : index
    %107 = vector.load %arg2[%c232, %c0_37] : memref<288x128xf32, #tpu.memory_space<vmem>>, vector<8x25xf32>
    %108 = vector.extract_strided_slice %107 {offsets = [0, 24], sizes = [8, 1], strides = [1, 1]} : vector<8x25xf32> to vector<8x1xf32>
    %109 = vector.extract_strided_slice %107 {offsets = [0, 8], sizes = [8, 16], strides = [1, 1]} : vector<8x25xf32> to vector<8x16xf32>
    %c8_i32_38 = arith.constant 8 : i32
    %110 = tpu.dynamic_rotate %106 by %c8_i32_38 dim 1 : vector<8x128xf32>, i32 -> vector<8x128xf32>
    %111 = tpu.concatenate %110, %106 in 0 : vector<8x128xf32>, vector<8x128xf32> -> vector<16x128xf32>
    %cst_39 = arith.constant dense<0.000000e+00> : vector<8x128xf32>
    %112 = tpu.matmul %109, %111, %cst_39 {dimension_numbers = #tpu.dot_dimension_numbers<[1], [0], [0], [1], [0, 0, 1, 1], [], []>} : vector<8x16xf32>, vector<16x128xf32>, vector<8x128xf32> -> vector<8x128xf32>
    %113 = vector.broadcast %108 : vector<8x1xf32> to vector<8x128xf32>
    %114 = arith.addf %112, %113 : vector<8x128xf32>
    %cst_40 = arith.constant 0.000000e+00 : f32
    %115 = vector.broadcast %cst_40 : f32 to vector<8x128xf32>
    %116 = arith.maximumf %114, %115 : vector<8x128xf32>
    %c240 = arith.constant 240 : index
    %c0_41 = arith.constant 0 : index
    %117 = vector.load %arg2[%c240, %c0_41] : memref<288x128xf32, #tpu.memory_space<vmem>>, vector<8x33xf32>
    %118 = vector.extract_strided_slice %117 {offsets = [0, 0], sizes = [8, 32], strides = [1, 1]} : vector<8x33xf32> to vector<8x32xf32>
    %cst_42 = arith.constant dense<0.000000e+00> : vector<8x128xf32>
    %119 = tpu.matmul %118, %94, %cst_42 {dimension_numbers = #tpu.dot_dimension_numbers<[1], [0], [0], [1], [0, 0, 1, 1], [], []>} : vector<8x32xf32>, vector<32x128xf32>, vector<8x128xf32> -> vector<8x128xf32>
    %120 = vector.extract_strided_slice %117 {offsets = [0, 32], sizes = [8, 1], strides = [1, 1]} : vector<8x33xf32> to vector<8x1xf32>
    %121 = vector.broadcast %120 : vector<8x1xf32> to vector<8x128xf32>
    %122 = arith.addf %119, %121 : vector<8x128xf32>
    %123 = arith.addf %116, %122 : vector<8x128xf32>
    %cst_43 = arith.constant 0.000000e+00 : f32
    %124 = vector.broadcast %cst_43 : f32 to vector<8x128xf32>
    %125 = arith.maximumf %123, %124 : vector<8x128xf32>
    %126 = vector.broadcast %0 : vector<1x128xf32> to vector<8x128xf32>
    %127 = arith.mulf %125, %126 : vector<8x128xf32>
    %c280 = arith.constant 280 : index
    %c0_44 = arith.constant 0 : index
    %128 = vector.load %arg2[%c280, %c0_44] : memref<288x128xf32, #tpu.memory_space<vmem>>, vector<1x15xf32>
    %129 = vector.extract_strided_slice %127 {offsets = [0, 0], sizes = [8, 15], strides = [1, 1]} : vector<8x128xf32> to vector<8x15xf32>
    %130 = vector.broadcast %128 : vector<1x15xf32> to vector<8x15xf32>
    %131 = arith.mulf %129, %130 : vector<8x15xf32>
    %cst_45 = arith.constant dense<0.000000e+00> : vector<8xf32>
    %132 = vector.multi_reduction <add>, %131, %cst_45 [1] : vector<8x15xf32> to vector<8xf32>
    %133 = vector.shape_cast %132 : vector<8xf32> to vector<8x1xf32>
    %cst_46 = arith.constant dense<0xFF800000> : vector<1xf32>
    %134 = vector.multi_reduction <maximumf>, %133, %cst_46 [0] : vector<8x1xf32> to vector<1xf32>
    %135 = vector.shape_cast %134 : vector<1xf32> to vector<1x1xf32>
    %136 = vector.broadcast %135 : vector<1x1xf32> to vector<8x1xf32>
    %137 = arith.subf %133, %136 : vector<8x1xf32>
    %138 = math.exp %137 : vector<8x1xf32>
    %cst_47 = arith.constant dense<0.000000e+00> : vector<1xf32>
    %139 = vector.multi_reduction <add>, %138, %cst_47 [0] : vector<8x1xf32> to vector<1xf32>
    %140 = vector.shape_cast %139 : vector<1xf32> to vector<1x1xf32>
    %141 = vector.broadcast %140 : vector<1x1xf32> to vector<8x1xf32>
    %142 = arith.divf %138, %141 : vector<8x1xf32>
    %143 = vector.broadcast %142 : vector<8x1xf32> to vector<8x15xf32>
    %144 = arith.mulf %143, %129 : vector<8x15xf32>
    %cst_48 = arith.constant dense<0.000000e+00> : vector<15xf32>
    %145 = vector.multi_reduction <add>, %144, %cst_48 [0] : vector<8x15xf32> to vector<15xf32>
    %146 = vector.shape_cast %145 : vector<15xf32> to vector<1x15xf32>
    %147 = vector.extract_strided_slice %127 {offsets = [0, 64], sizes = [8, 15], strides = [1, 1]} : vector<8x128xf32> to vector<8x15xf32>
    %148 = vector.broadcast %128 : vector<1x15xf32> to vector<8x15xf32>
    %149 = arith.mulf %147, %148 : vector<8x15xf32>
    %cst_49 = arith.constant dense<0.000000e+00> : vector<8xf32>
    %150 = vector.multi_reduction <add>, %149, %cst_49 [1] : vector<8x15xf32> to vector<8xf32>
    %151 = vector.shape_cast %150 : vector<8xf32> to vector<8x1xf32>
    %cst_50 = arith.constant dense<0xFF800000> : vector<1xf32>
    %152 = vector.multi_reduction <maximumf>, %151, %cst_50 [0] : vector<8x1xf32> to vector<1xf32>
    %153 = vector.shape_cast %152 : vector<1xf32> to vector<1x1xf32>
    %154 = vector.broadcast %153 : vector<1x1xf32> to vector<8x1xf32>
    %155 = arith.subf %151, %154 : vector<8x1xf32>
    %156 = math.exp %155 : vector<8x1xf32>
    %cst_51 = arith.constant dense<0.000000e+00> : vector<1xf32>
    %157 = vector.multi_reduction <add>, %156, %cst_51 [0] : vector<8x1xf32> to vector<1xf32>
    %158 = vector.shape_cast %157 : vector<1xf32> to vector<1x1xf32>
    %159 = vector.broadcast %158 : vector<1x1xf32> to vector<8x1xf32>
    %160 = arith.divf %156, %159 : vector<8x1xf32>
    %161 = vector.broadcast %160 : vector<8x1xf32> to vector<8x15xf32>
    %162 = arith.mulf %161, %147 : vector<8x15xf32>
    %cst_52 = arith.constant dense<0.000000e+00> : vector<15xf32>
    %163 = vector.multi_reduction <add>, %162, %cst_52 [0] : vector<8x15xf32> to vector<15xf32>
    %164 = vector.shape_cast %163 : vector<15xf32> to vector<1x15xf32>
    %165 = tpu.concatenate %146, %164 in 0 : vector<1x15xf32>, vector<1x15xf32> -> vector<2x15xf32>
    %c282 = arith.constant 282 : index
    %c0_53 = arith.constant 0 : index
    %166 = vector.load %arg2[%c282, %c0_53] : memref<288x128xf32, #tpu.memory_space<vmem>>, vector<1x128xf32>
    %c283 = arith.constant 283 : index
    %c0_54 = arith.constant 0 : index
    %167 = vector.load %arg2[%c283, %c0_54] : memref<288x128xf32, #tpu.memory_space<vmem>>, vector<1x128xf32>
    %c284 = arith.constant 284 : index
    %c0_55 = arith.constant 0 : index
    %168 = vector.load %arg2[%c284, %c0_55] : memref<288x128xf32, #tpu.memory_space<vmem>>, vector<1x128xf32>
    %c281 = arith.constant 281 : index
    %c0_56 = arith.constant 0 : index
    %169 = vector.load %arg2[%c281, %c0_56] : memref<288x128xf32, #tpu.memory_space<vmem>>, vector<1x15xf32>
    %170 = vector.broadcast %169 : vector<1x15xf32> to vector<2x15xf32>
    %171 = arith.mulf %165, %170 : vector<2x15xf32>
    %cst_57 = arith.constant dense<0.000000e+00> : vector<2xf32>
    %172 = vector.multi_reduction <add>, %171, %cst_57 [1] : vector<2x15xf32> to vector<2xf32>
    %173 = vector.shape_cast %172 : vector<2xf32> to vector<2x1xf32>
    %174 = vector.broadcast %173 : vector<2x1xf32> to vector<2x128xf32>
    %175 = vector.broadcast %166 : vector<1x128xf32> to vector<2x128xf32>
    %176 = arith.mulf %174, %175 : vector<2x128xf32>
    %177 = vector.broadcast %168 : vector<1x128xf32> to vector<2x128xf32>
    %178 = arith.addf %176, %177 : vector<2x128xf32>
    %179 = vector.extract_strided_slice %1 {offsets = [0, 32], sizes = [8, 1], strides = [1, 1]} : vector<8x128xf32> to vector<8x1xf32>
    %180 = vector.extract_strided_slice %1 {offsets = [0, 96], sizes = [8, 1], strides = [1, 1]} : vector<8x128xf32> to vector<8x1xf32>
    %181 = tpu.concatenate %179, %180 in 1 : vector<8x1xf32>, vector<8x1xf32> -> vector<8x2xf32>
    %182 = vector.shape_cast %178 : vector<2x128xf32> to vector<1x2x128xf32>
    %183 = vector.shape_cast %181 : vector<8x2xf32> to vector<8x2x1xf32>
    %184 = vector.shape_cast %167 : vector<1x128xf32> to vector<1x1x128xf32>
    %185 = vector.broadcast %183 : vector<8x2x1xf32> to vector<8x2x128xf32>
    %186 = vector.broadcast %184 : vector<1x1x128xf32> to vector<8x2x128xf32>
    %187 = arith.mulf %185, %186 : vector<8x2x128xf32>
    %188 = vector.broadcast %182 : vector<1x2x128xf32> to vector<8x2x128xf32>
    %189 = arith.addf %188, %187 : vector<8x2x128xf32>
    %c248 = arith.constant 248 : index
    %c0_58 = arith.constant 0 : index
    %190 = vector.load %arg2[%c248, %c0_58] : memref<288x128xf32, #tpu.memory_space<vmem>>, vector<32x128xf32>
    %191 = vector.extract_strided_slice %189 {offsets = [0, 0, 0], sizes = [1, 2, 128], strides = [1, 1, 1]} : vector<8x2x128xf32> to vector<1x2x128xf32>
    %192 = vector.shape_cast %191 : vector<1x2x128xf32> to vector<2x128xf32>
    %193 = arith.negf %192 : vector<2x128xf32>
    %194 = math.exp %193 : vector<2x128xf32>
    %cst_59 = arith.constant 1.000000e+00 : f32
    %195 = vector.broadcast %cst_59 : f32 to vector<2x128xf32>
    %196 = arith.addf %195, %194 : vector<2x128xf32>
    %197 = arith.divf %195, %196 : vector<2x128xf32>
    %198 = math.tanh %192 : vector<2x128xf32>
    %199 = vector.extract_strided_slice %197 {offsets = [0, 0], sizes = [2, 32], strides = [1, 1]} : vector<2x128xf32> to vector<2x32xf32>
    %200 = vector.extract_strided_slice %197 {offsets = [0, 96], sizes = [2, 32], strides = [1, 1]} : vector<2x128xf32> to vector<2x32xf32>
    %201 = vector.extract_strided_slice %198 {offsets = [0, 64], sizes = [2, 32], strides = [1, 1]} : vector<2x128xf32> to vector<2x32xf32>
    %202 = arith.mulf %199, %201 : vector<2x32xf32>
    %203 = math.tanh %202 : vector<2x32xf32>
    %204 = arith.mulf %200, %203 : vector<2x32xf32>
    %cst_60 = arith.constant dense<0.000000e+00> : vector<2x128xf32>
    %205 = tpu.matmul %204, %190, %cst_60 {dimension_numbers = #tpu.dot_dimension_numbers<[1], [0], [0], [1], [0, 0, 1, 1], [], []>} : vector<2x32xf32>, vector<32x128xf32>, vector<2x128xf32> -> vector<2x128xf32>
    %206 = vector.extract_strided_slice %189 {offsets = [1, 0, 0], sizes = [1, 2, 128], strides = [1, 1, 1]} : vector<8x2x128xf32> to vector<1x2x128xf32>
    %207 = vector.shape_cast %206 : vector<1x2x128xf32> to vector<2x128xf32>
    %208 = arith.addf %205, %207 : vector<2x128xf32>
    %209 = arith.negf %208 : vector<2x128xf32>
    %210 = math.exp %209 : vector<2x128xf32>
    %cst_61 = arith.constant 1.000000e+00 : f32
    %211 = vector.broadcast %cst_61 : f32 to vector<2x128xf32>
    %212 = arith.addf %211, %210 : vector<2x128xf32>
    %213 = arith.divf %211, %212 : vector<2x128xf32>
    %214 = math.tanh %208 : vector<2x128xf32>
    %215 = vector.extract_strided_slice %213 {offsets = [0, 0], sizes = [2, 32], strides = [1, 1]} : vector<2x128xf32> to vector<2x32xf32>
    %216 = vector.extract_strided_slice %213 {offsets = [0, 32], sizes = [2, 32], strides = [1, 1]} : vector<2x128xf32> to vector<2x32xf32>
    %217 = vector.extract_strided_slice %213 {offsets = [0, 96], sizes = [2, 32], strides = [1, 1]} : vector<2x128xf32> to vector<2x32xf32>
    %218 = vector.extract_strided_slice %214 {offsets = [0, 64], sizes = [2, 32], strides = [1, 1]} : vector<2x128xf32> to vector<2x32xf32>
    %219 = arith.mulf %216, %202 : vector<2x32xf32>
    %220 = arith.mulf %215, %218 : vector<2x32xf32>
    %221 = arith.addf %219, %220 : vector<2x32xf32>
    %222 = math.tanh %221 : vector<2x32xf32>
    %223 = arith.mulf %217, %222 : vector<2x32xf32>
    %cst_62 = arith.constant dense<0.000000e+00> : vector<2x128xf32>
    %224 = tpu.matmul %223, %190, %cst_62 {dimension_numbers = #tpu.dot_dimension_numbers<[1], [0], [0], [1], [0, 0, 1, 1], [], []>} : vector<2x32xf32>, vector<32x128xf32>, vector<2x128xf32> -> vector<2x128xf32>
    %225 = vector.extract_strided_slice %189 {offsets = [2, 0, 0], sizes = [1, 2, 128], strides = [1, 1, 1]} : vector<8x2x128xf32> to vector<1x2x128xf32>
    %226 = vector.shape_cast %225 : vector<1x2x128xf32> to vector<2x128xf32>
    %227 = arith.addf %224, %226 : vector<2x128xf32>
    %228 = arith.negf %227 : vector<2x128xf32>
    %229 = math.exp %228 : vector<2x128xf32>
    %cst_63 = arith.constant 1.000000e+00 : f32
    %230 = vector.broadcast %cst_63 : f32 to vector<2x128xf32>
    %231 = arith.addf %230, %229 : vector<2x128xf32>
    %232 = arith.divf %230, %231 : vector<2x128xf32>
    %233 = math.tanh %227 : vector<2x128xf32>
    %234 = vector.extract_strided_slice %232 {offsets = [0, 0], sizes = [2, 32], strides = [1, 1]} : vector<2x128xf32> to vector<2x32xf32>
    %235 = vector.extract_strided_slice %232 {offsets = [0, 32], sizes = [2, 32], strides = [1, 1]} : vector<2x128xf32> to vector<2x32xf32>
    %236 = vector.extract_strided_slice %232 {offsets = [0, 96], sizes = [2, 32], strides = [1, 1]} : vector<2x128xf32> to vector<2x32xf32>
    %237 = vector.extract_strided_slice %233 {offsets = [0, 64], sizes = [2, 32], strides = [1, 1]} : vector<2x128xf32> to vector<2x32xf32>
    %238 = arith.mulf %235, %221 : vector<2x32xf32>
    %239 = arith.mulf %234, %237 : vector<2x32xf32>
    %240 = arith.addf %238, %239 : vector<2x32xf32>
    %241 = math.tanh %240 : vector<2x32xf32>
    %242 = arith.mulf %236, %241 : vector<2x32xf32>
    %cst_64 = arith.constant dense<0.000000e+00> : vector<2x128xf32>
    %243 = tpu.matmul %242, %190, %cst_64 {dimension_numbers = #tpu.dot_dimension_numbers<[1], [0], [0], [1], [0, 0, 1, 1], [], []>} : vector<2x32xf32>, vector<32x128xf32>, vector<2x128xf32> -> vector<2x128xf32>
    %244 = vector.extract_strided_slice %189 {offsets = [3, 0, 0], sizes = [1, 2, 128], strides = [1, 1, 1]} : vector<8x2x128xf32> to vector<1x2x128xf32>
    %245 = vector.shape_cast %244 : vector<1x2x128xf32> to vector<2x128xf32>
    %246 = arith.addf %243, %245 : vector<2x128xf32>
    %247 = arith.negf %246 : vector<2x128xf32>
    %248 = math.exp %247 : vector<2x128xf32>
    %cst_65 = arith.constant 1.000000e+00 : f32
    %249 = vector.broadcast %cst_65 : f32 to vector<2x128xf32>
    %250 = arith.addf %249, %248 : vector<2x128xf32>
    %251 = arith.divf %249, %250 : vector<2x128xf32>
    %252 = math.tanh %246 : vector<2x128xf32>
    %253 = vector.extract_strided_slice %251 {offsets = [0, 0], sizes = [2, 32], strides = [1, 1]} : vector<2x128xf32> to vector<2x32xf32>
    %254 = vector.extract_strided_slice %251 {offsets = [0, 32], sizes = [2, 32], strides = [1, 1]} : vector<2x128xf32> to vector<2x32xf32>
    %255 = vector.extract_strided_slice %251 {offsets = [0, 96], sizes = [2, 32], strides = [1, 1]} : vector<2x128xf32> to vector<2x32xf32>
    %256 = vector.extract_strided_slice %252 {offsets = [0, 64], sizes = [2, 32], strides = [1, 1]} : vector<2x128xf32> to vector<2x32xf32>
    %257 = arith.mulf %254, %240 : vector<2x32xf32>
    %258 = arith.mulf %253, %256 : vector<2x32xf32>
    %259 = arith.addf %257, %258 : vector<2x32xf32>
    %260 = math.tanh %259 : vector<2x32xf32>
    %261 = arith.mulf %255, %260 : vector<2x32xf32>
    %cst_66 = arith.constant dense<0.000000e+00> : vector<2x128xf32>
    %262 = tpu.matmul %261, %190, %cst_66 {dimension_numbers = #tpu.dot_dimension_numbers<[1], [0], [0], [1], [0, 0, 1, 1], [], []>} : vector<2x32xf32>, vector<32x128xf32>, vector<2x128xf32> -> vector<2x128xf32>
    %263 = vector.extract_strided_slice %189 {offsets = [4, 0, 0], sizes = [1, 2, 128], strides = [1, 1, 1]} : vector<8x2x128xf32> to vector<1x2x128xf32>
    %264 = vector.shape_cast %263 : vector<1x2x128xf32> to vector<2x128xf32>
    %265 = arith.addf %262, %264 : vector<2x128xf32>
    %266 = arith.negf %265 : vector<2x128xf32>
    %267 = math.exp %266 : vector<2x128xf32>
    %cst_67 = arith.constant 1.000000e+00 : f32
    %268 = vector.broadcast %cst_67 : f32 to vector<2x128xf32>
    %269 = arith.addf %268, %267 : vector<2x128xf32>
    %270 = arith.divf %268, %269 : vector<2x128xf32>
    %271 = math.tanh %265 : vector<2x128xf32>
    %272 = vector.extract_strided_slice %270 {offsets = [0, 0], sizes = [2, 32], strides = [1, 1]} : vector<2x128xf32> to vector<2x32xf32>
    %273 = vector.extract_strided_slice %270 {offsets = [0, 32], sizes = [2, 32], strides = [1, 1]} : vector<2x128xf32> to vector<2x32xf32>
    %274 = vector.extract_strided_slice %270 {offsets = [0, 96], sizes = [2, 32], strides = [1, 1]} : vector<2x128xf32> to vector<2x32xf32>
    %275 = vector.extract_strided_slice %271 {offsets = [0, 64], sizes = [2, 32], strides = [1, 1]} : vector<2x128xf32> to vector<2x32xf32>
    %276 = arith.mulf %273, %259 : vector<2x32xf32>
    %277 = arith.mulf %272, %275 : vector<2x32xf32>
    %278 = arith.addf %276, %277 : vector<2x32xf32>
    %279 = math.tanh %278 : vector<2x32xf32>
    %280 = arith.mulf %274, %279 : vector<2x32xf32>
    %cst_68 = arith.constant dense<0.000000e+00> : vector<2x128xf32>
    %281 = tpu.matmul %280, %190, %cst_68 {dimension_numbers = #tpu.dot_dimension_numbers<[1], [0], [0], [1], [0, 0, 1, 1], [], []>} : vector<2x32xf32>, vector<32x128xf32>, vector<2x128xf32> -> vector<2x128xf32>
    %282 = vector.extract_strided_slice %189 {offsets = [5, 0, 0], sizes = [1, 2, 128], strides = [1, 1, 1]} : vector<8x2x128xf32> to vector<1x2x128xf32>
    %283 = vector.shape_cast %282 : vector<1x2x128xf32> to vector<2x128xf32>
    %284 = arith.addf %281, %283 : vector<2x128xf32>
    %285 = arith.negf %284 : vector<2x128xf32>
    %286 = math.exp %285 : vector<2x128xf32>
    %cst_69 = arith.constant 1.000000e+00 : f32
    %287 = vector.broadcast %cst_69 : f32 to vector<2x128xf32>
    %288 = arith.addf %287, %286 : vector<2x128xf32>
    %289 = arith.divf %287, %288 : vector<2x128xf32>
    %290 = math.tanh %284 : vector<2x128xf32>
    %291 = vector.extract_strided_slice %289 {offsets = [0, 0], sizes = [2, 32], strides = [1, 1]} : vector<2x128xf32> to vector<2x32xf32>
    %292 = vector.extract_strided_slice %289 {offsets = [0, 32], sizes = [2, 32], strides = [1, 1]} : vector<2x128xf32> to vector<2x32xf32>
    %293 = vector.extract_strided_slice %289 {offsets = [0, 96], sizes = [2, 32], strides = [1, 1]} : vector<2x128xf32> to vector<2x32xf32>
    %294 = vector.extract_strided_slice %290 {offsets = [0, 64], sizes = [2, 32], strides = [1, 1]} : vector<2x128xf32> to vector<2x32xf32>
    %295 = arith.mulf %292, %278 : vector<2x32xf32>
    %296 = arith.mulf %291, %294 : vector<2x32xf32>
    %297 = arith.addf %295, %296 : vector<2x32xf32>
    %298 = math.tanh %297 : vector<2x32xf32>
    %299 = arith.mulf %293, %298 : vector<2x32xf32>
    %cst_70 = arith.constant dense<0.000000e+00> : vector<2x128xf32>
    %300 = tpu.matmul %299, %190, %cst_70 {dimension_numbers = #tpu.dot_dimension_numbers<[1], [0], [0], [1], [0, 0, 1, 1], [], []>} : vector<2x32xf32>, vector<32x128xf32>, vector<2x128xf32> -> vector<2x128xf32>
    %301 = vector.extract_strided_slice %189 {offsets = [6, 0, 0], sizes = [1, 2, 128], strides = [1, 1, 1]} : vector<8x2x128xf32> to vector<1x2x128xf32>
    %302 = vector.shape_cast %301 : vector<1x2x128xf32> to vector<2x128xf32>
    %303 = arith.addf %300, %302 : vector<2x128xf32>
    %304 = arith.negf %303 : vector<2x128xf32>
    %305 = math.exp %304 : vector<2x128xf32>
    %cst_71 = arith.constant 1.000000e+00 : f32
    %306 = vector.broadcast %cst_71 : f32 to vector<2x128xf32>
    %307 = arith.addf %306, %305 : vector<2x128xf32>
    %308 = arith.divf %306, %307 : vector<2x128xf32>
    %309 = math.tanh %303 : vector<2x128xf32>
    %310 = vector.extract_strided_slice %308 {offsets = [0, 0], sizes = [2, 32], strides = [1, 1]} : vector<2x128xf32> to vector<2x32xf32>
    %311 = vector.extract_strided_slice %308 {offsets = [0, 32], sizes = [2, 32], strides = [1, 1]} : vector<2x128xf32> to vector<2x32xf32>
    %312 = vector.extract_strided_slice %308 {offsets = [0, 96], sizes = [2, 32], strides = [1, 1]} : vector<2x128xf32> to vector<2x32xf32>
    %313 = vector.extract_strided_slice %309 {offsets = [0, 64], sizes = [2, 32], strides = [1, 1]} : vector<2x128xf32> to vector<2x32xf32>
    %314 = arith.mulf %311, %297 : vector<2x32xf32>
    %315 = arith.mulf %310, %313 : vector<2x32xf32>
    %316 = arith.addf %314, %315 : vector<2x32xf32>
    %317 = math.tanh %316 : vector<2x32xf32>
    %318 = arith.mulf %312, %317 : vector<2x32xf32>
    %cst_72 = arith.constant dense<0.000000e+00> : vector<2x128xf32>
    %319 = tpu.matmul %318, %190, %cst_72 {dimension_numbers = #tpu.dot_dimension_numbers<[1], [0], [0], [1], [0, 0, 1, 1], [], []>} : vector<2x32xf32>, vector<32x128xf32>, vector<2x128xf32> -> vector<2x128xf32>
    %320 = vector.extract_strided_slice %189 {offsets = [7, 0, 0], sizes = [1, 2, 128], strides = [1, 1, 1]} : vector<8x2x128xf32> to vector<1x2x128xf32>
    %321 = vector.shape_cast %320 : vector<1x2x128xf32> to vector<2x128xf32>
    %322 = arith.addf %319, %321 : vector<2x128xf32>
    %323 = arith.negf %322 : vector<2x128xf32>
    %324 = math.exp %323 : vector<2x128xf32>
    %cst_73 = arith.constant 1.000000e+00 : f32
    %325 = vector.broadcast %cst_73 : f32 to vector<2x128xf32>
    %326 = arith.addf %325, %324 : vector<2x128xf32>
    %327 = arith.divf %325, %326 : vector<2x128xf32>
    %328 = math.tanh %322 : vector<2x128xf32>
    %329 = vector.extract_strided_slice %327 {offsets = [0, 0], sizes = [2, 32], strides = [1, 1]} : vector<2x128xf32> to vector<2x32xf32>
    %330 = vector.extract_strided_slice %327 {offsets = [0, 32], sizes = [2, 32], strides = [1, 1]} : vector<2x128xf32> to vector<2x32xf32>
    %331 = vector.extract_strided_slice %327 {offsets = [0, 96], sizes = [2, 32], strides = [1, 1]} : vector<2x128xf32> to vector<2x32xf32>
    %332 = vector.extract_strided_slice %328 {offsets = [0, 64], sizes = [2, 32], strides = [1, 1]} : vector<2x128xf32> to vector<2x32xf32>
    %333 = arith.mulf %330, %316 : vector<2x32xf32>
    %334 = arith.mulf %329, %332 : vector<2x32xf32>
    %335 = arith.addf %333, %334 : vector<2x32xf32>
    %336 = math.tanh %335 : vector<2x32xf32>
    %337 = arith.mulf %331, %336 : vector<2x32xf32>
    %c285 = arith.constant 285 : index
    %c0_74 = arith.constant 0 : index
    %338 = vector.load %arg2[%c285, %c0_74] : memref<288x128xf32, #tpu.memory_space<vmem>>, vector<1x32xf32>
    %c285_75 = arith.constant 285 : index
    %c32_76 = arith.constant 32 : index
    %339 = vector.load %arg2[%c285_75, %c32_76] : memref<288x128xf32, #tpu.memory_space<vmem>>, vector<1x15xf32>
    %c285_77 = arith.constant 285 : index
    %c47 = arith.constant 47 : index
    %340 = vector.load %arg2[%c285_77, %c47] : memref<288x128xf32, #tpu.memory_space<vmem>>, vector<1x1xf32>
    %341 = vector.broadcast %338 : vector<1x32xf32> to vector<2x32xf32>
    %342 = arith.mulf %337, %341 : vector<2x32xf32>
    %cst_78 = arith.constant dense<0.000000e+00> : vector<2xf32>
    %343 = vector.multi_reduction <add>, %342, %cst_78 [1] : vector<2x32xf32> to vector<2xf32>
    %344 = vector.shape_cast %343 : vector<2xf32> to vector<2x1xf32>
    %345 = vector.broadcast %339 : vector<1x15xf32> to vector<2x15xf32>
    %346 = arith.mulf %165, %345 : vector<2x15xf32>
    %cst_79 = arith.constant dense<0.000000e+00> : vector<2xf32>
    %347 = vector.multi_reduction <add>, %346, %cst_79 [1] : vector<2x15xf32> to vector<2xf32>
    %348 = vector.shape_cast %347 : vector<2xf32> to vector<2x1xf32>
    %349 = arith.addf %344, %348 : vector<2x1xf32>
    %350 = vector.broadcast %340 : vector<1x1xf32> to vector<2x1xf32>
    %351 = arith.addf %349, %350 : vector<2x1xf32>
    %352 = vector.shape_cast %351 : vector<2x1xf32> to vector<2x1xf32>
    %353 = vector.broadcast %352 : vector<2x1xf32> to vector<2x128xf32>
    %c0_80 = arith.constant 0 : index
    %c0_81 = arith.constant 0 : index
    %354 = vector.load %arg3[%c0_80, %c0_81] : memref<2x128xf32, #tpu.memory_space<vmem>>, vector<2x128xf32>
    tpu.vector_store %arg3[%c0_80, %c0_81], %353 {strides = array<i32>} : memref<2x128xf32, #tpu.memory_space<vmem>>, vector<2x128xf32>,
    return
  }
  func.func @transform_0(%arg0: i32) -> (i32, i32) {
    %c0_i32 = arith.constant 0 : i32
    %c0_i32_0 = arith.constant 0 : i32
    %c0_i32_1 = arith.constant 0 : i32
    return %c0_i32, %c0_i32_0 : i32, i32
  }
  func.func @transform_1(%arg0: i32) -> (i32, i32) {
    %c0_i32 = arith.constant 0 : i32
    %c0_i32_0 = arith.constant 0 : i32
    %c0_i32_1 = arith.constant 0 : i32
    return %c0_i32, %c0_i32_0 : i32, i32
  }
  func.func @transform_2(%arg0: i32) -> (i32, i32) {
    %c0_i32 = arith.constant 0 : i32
    %c0_i32_0 = arith.constant 0 : i32
    %c0_i32_1 = arith.constant 0 : i32
    return %c0_i32, %c0_i32_0 : i32, i32
  }
}

</mosaic_0001>

<bundles_post_ra>
// kernel: tpu_custom_call.1
= control target key start
LH: loop header
LB: loop body
LE: loop exit
PB: predicated region body
PF: predicated region fallthrough
CT: control target
= control target key end

     0   :  { %7 = vsyncpa [#allocation3], 0  ;;  %s2062_s0 = inlined_call_operand.hbm [shape: f32[8,128], index: 0, kind: input, shape index: {}]   ;;  %s2063_s1 = inlined_call_operand.hbm [shape: f32[288,128], index: 1, kind: input, shape index: {}]   ;;  %s2064_s2 = inlined_call_operand.hbm [shape: f32[2,128], index: 2, kind: output, shape index: {}]  }
   0x1   :  { %8 = vsyncpa [#allocation6], 0 }
   0x2   :  { %9 = vsyncpa [#allocation4], 0  ;;  %s15_s11 = sshll.u32 %s2062_s0, 4  ;;  %s1801_s12 = smov [#allocation2]   ;;  %s16_s11 = int_to_ptr.hbm [resolvable:$true] %s15_s11 }
   0x3   :  { %s17_s13 = sshll.u32 %s1801_s12, 4  ;;  %s25_s16 = sshll.u32 %s2063_s1, 4  ;;  %s18_s13 = int_to_ptr.vmem [resolvable:$true] %s17_s13  ;;  %s26_s16 = int_to_ptr.hbm [resolvable:$true] %s25_s16 }
   0x4   :  { %20 = dma.hbm_to_vmem [thread:$0]  %s16_s11, 128, %s18_s13, [#allocation3]  }
   0x5   :  { %s1802_s17 = smov [#allocation5]   ;;  %s1803_s19 = smov 128  }
   0x6   :  { %s27_s18 = sshll.u32 %s1802_s17, 4  ;;  %s1804_s20 = smov 8   ;;  %s28_s18 = int_to_ptr.vmem [resolvable:$true] %s27_s18 }
   0x7   :  { %33 = dma.hbm_to_vmem [thread:$0]  %s26_s16, 4608, %s28_s18, [#allocation6], %s1803_s19, %s1803_s19, %s1804_s20  }
   0x8   :  { %1795 = dma.done.wait [#allocation3], 128  }
   0x9   :  { %1796 = vsyncadd [#allocation3], 4294967168 }
   0xa   :  { %1797 = dma.done.wait [#allocation6], 4608  }
   0xb   :  { %1798 = vsyncadd [#allocation6], 4294962688  ;;  %v1841_v0 = vld [vmem:[#allocation2] sm:$0xff]  ;;  %s1805_s0 = smov 1   ;;  %s1806_s1 = smov 2   ;;  %v45_v2 = vld [vmem:[#allocation5 + $0x8] sm:$0xff] }
   0xc   :  { %50 = vrot.lane.b32.xlu0 %v1841_v0, %s1805_s0  ;;  %94 = vmatpush.msra.mxu0 %v1841_v0  ;;  %v47_v1 = vld [vmem:[#allocation5 + $0x18] sm:$0xff]  ;;  %v1807_v3 = vmov 24   ;;  %v44_v5 = vld [vmem:[#allocation5] sm:$0xff]  ;;  %v46_v6 = vld [vmem:[#allocation5 + $0x10] sm:$0xff]  ;;  %vm72_vm0 = vcmask 195584   ;;  %v1808_v32 = vmov 96  }
   0xd   :  { %249 = vmatpush.msra.mxu2 %v1841_v0  ;;  %1518 = vset.pattern.permute.xlu1 %v1807_v3  ;;  %v1851_v15 = vld [vmem:[#allocation5 + $0x11e] ss:$0 sm:$0xff]  ;;  %v201_v33 = vld [vmem:[#allocation5 + $0x40] sm:$0xff]  ;;  %vm225_vm1 = vcmask 64512   ;;  %v120_v34 = vld [vmem:[#allocation5 + $0x28] sm:$0xff]  ;;  %v1809_v36 = vmov 8  }
   0xe   :  { %1519 = vset.pattern.permute.xlu2 %v1807_v3  ;;  %69 = vperm.xlu1 %1518, %v47_v1   ;;  %v122_v31 = vld [vmem:[#allocation5 + $0x38] sm:$0xff]  ;;  %v202_v37 = vld [vmem:[#allocation5 + $0x48] sm:$0xff]  ;;  %v121_v38 = vld [vmem:[#allocation5 + $0x30] sm:$0xff]  ;;  %vm159_vm2 = vcmask 785408   ;;  %s1810_s21 = smov 4   ;;  %s1811_s22 = smov 96  }
   0xf   :  { %59 = vperm.xlu2 %1519, %v45_v2   ;;  %1462 = vmatmul.msk.f32.vlgmr.msra.gmra.mxu2 %vm225_vm1, %v201_v33  ;;  %v204_v35 = vld [vmem:[#allocation5 + $0x58] sm:$0xff]  ;;  %v203_v39 = vld [vmem:[#allocation5 + $0x50] sm:$0xff]  ;;  %v119_v40 = vld [vmem:[#allocation5 + $0x20] sm:$0xff]  ;;  %s1812_s23 = smov 120   ;;  %vm647_vm3 = vcmask 523264   ;;  %vm712_vm4 = vcmask 261120  }
  0x10   :  { %1542 = vset.pattern.permute.xlu0 %v1809_v36  ;;  %s1814_s24 = smov 64   ;;  %vm682_vm5 = vcmask 130048   ;;  %vm741_vm6 = vcmask 121856   ;;  %vm826_vm11 = vcmask 646656   ;;  %s1815_s25 = smov 33  }
  0x11   :  { %s1816_s26 = smov 32   ;;  %s1818_s27 = smov [#allocation7]  }
  0x12   :  { %s1441_s28 = sshll.u32 %s1818_s27, 4  ;;  %s1443_s3 = sshll.u32 %s2064_s2, 4  ;;  %s1442_s28 = int_to_ptr.vmem [resolvable:$true] %s1441_s28  ;;  %s1444_s3 = int_to_ptr.hbm [resolvable:$true] %s1443_s3 }
  0x14   :  { %48 = vrot.lane.b32.xlu0 %v1841_v0, %s1806_s1 }
  0x16   :  { %64 = vperm.xlu1 %1518, %v46_v6  }
  0x17   :  { %54 = vperm.xlu2 %1519, %v44_v5   ;;  %1463 = vmatmul.msk.f32.gmra.mxu2 %vm225_vm1, %v202_v37 }
  0x1e   :  { %1540 = vset.pattern.permute.xlu1 %v1808_v32 }
  0x1f   :  { %1541 = vset.pattern.permute.xlu2 %v1808_v32  ;;  %1464 = vmatmul.msk.f32.gmra.mxu2 %vm225_vm1, %v203_v39 }
  0x27   :  { %1465 = vmatmul.msk.f32.gmra.mxu2 %vm225_vm1, %v204_v35  ;;  %vm846_vm1 = vcmask 115712  }
  0x69   :  { %v60_v8 = vpop.permute.xlu2 %59 }
  0x71   :  { %v55_v10 = vpop.permute.xlu2 %54 }
  0x7e   :  { %v51_v4 = vpop.permute.xlu0 %50 }
  0x7f   :  { %95 = vmatpush.msra.mxu0 %v51_v4 }
  0x80   :  { %v70_v12 = vpop.permute.xlu1 %69 }
  0x86   :  { %v49_v7 = vpop.permute.xlu0 %48 }
  0x87   :  { %96 = vmatpush.msra.mxu0 %v49_v7 }
  0x88   :  { %1454 = vmatmul.msk.f32.vlgmr.msra.gmra.mxu0 %vm72_vm0, %v44_v5  ;;  %v65_v22 = vpop.permute.xlu1 %64 }
  0x90   :  { %1455 = vmatmul.msk.f32.gmra.mxu0 %vm72_vm0, %v45_v2 }
  0x92   :  { %v251_v57 = vpop.f32.mrf.mxu2 }
  0x98   :  { %1456 = vmatmul.msk.f32.gmra.mxu0 %vm72_vm0, %v46_v6 }
  0x9a   :  { %v254_v63 = vpop.f32.mrf.mxu2 }
  0xa0   :  { %1457 = vmatmul.msk.f32.gmra.mxu0 %vm72_vm0, %v47_v1  ;;  %vm838_vm0 = vcmask 1040384  }
 0x105   :  { %v98_v9 = vpop.f32.mrf.mxu0 }
 0x106   :  { %v99_v11 = vadd.f32 %v98_v9, %v55_v10  ;;  %v257_v10 = vpop.f32.mrf.mxu2 }
 0x108   :  { %v110_v14 = vmax.f32 %v99_v11, 0.0 }
 0x10a   :  { %v115_v18 = vmul.f32 %v1851_v15, %v110_v14 }
 0x10d   :  { %v101_v13 = vpop.f32.mrf.mxu0 }
 0x10e   :  { %v102_v16 = vadd.f32 %v101_v13, %v60_v8 }
 0x110   :  { %v111_v17 = vmax.f32 %v102_v16, 0.0 }
 0x112   :  { %v116_v19 = vmul.f32 %v1851_v15, %v111_v17 }
 0x114   :  { %v1525_v20 = vpack.i.bf16 %v115_v18, %v116_v19 }
 0x115   :  { %v104_v21 = vpop.f32.mrf.mxu0 }
 0x116   :  { %1526 = vrot.lane.b32.xlu1 %v1525_v20, %s1805_s0  ;;  %v105_v23 = vadd.f32 %v104_v21, %v65_v22  ;;  %v260_v22 = vpop.f32.mrf.mxu2 }
 0x118   :  { %v112_v25 = vmax.f32 %v105_v23, 0.0 }
 0x11a   :  { %v117_v28 = vmul.f32 %v1851_v15, %v112_v25 }
 0x11d   :  { %v107_v24 = vpop.f32.mrf.mxu0 }
 0x11e   :  { %v108_v26 = vadd.f32 %v107_v24, %v70_v12  ;;  %156 = vperm.xlu1 %1540, %v122_v31  }
 0x120   :  { %v113_v27 = vmax.f32 %v108_v26, 0.0 }
 0x122   :  { %v118_v29 = vmul.f32 %v1851_v15, %v113_v27 }
 0x124   :  { %172 = vmatpush.msra.mxu1 %v118_v29  ;;  %v1530_v30 = vpack.i.bf16 %v117_v28, %v118_v29 }
 0x126   :  { %1531 = vrot.lane.b32.xlu2 %v1530_v30, %s1806_s1  ;;  %1521 = vrot.lane.b32.xlu0 %v1530_v30, %s1805_s0 }
 0x127   :  { %173 = vmatpush.msra.mxu1 %v117_v28  ;;  %146 = vperm.xlu1 %1540, %v120_v34  }
 0x129   :  { %174 = vmatpush.msra.mxu1 %v116_v19 }
 0x12b   :  { %175 = vmatpush.msra.mxu1 %v115_v18 }
 0x12e   :  { %1536 = vrot.lane.b32.xlu0 %v1525_v20, %s1806_s1  ;;  %151 = vperm.xlu2 %1541, %v121_v38  }
 0x12f   :  { %141 = vperm.xlu1 %1540, %v119_v40  }
 0x136   :  { %222 = vperm.xlu0 %1542, %v204_v35   ;;  %1543 = vset.pattern.permute.xlu2 %v1809_v36  ;;  %v277_v35 = vld [vmem:[#allocation5 + $0x70] sm:$0xff] }
 0x137   :  { %217 = vperm.xlu2 %1543, %v203_v39   ;;  %v278_v39 = vld [vmem:[#allocation5 + $0x78] sm:$0xff] }
 0x13e   :  { %207 = vperm.xlu0 %1542, %v201_v33  }
 0x13f   :  { %212 = vperm.xlu2 %1543, %v202_v37  }
 0x146   :  { %1565 = vset.pattern.permute.xlu0 %v1808_v32 }
 0x147   :  { %1564 = vset.pattern.permute.xlu2 %v1808_v32 }
 0x180   :  { %v1532_v46 = vpop.permute.xlu2 %1531 }
 0x181   :  { %v1533_v48 = vunpack.i.l.bf16 %v1532_v46  ;;  %v1534_v50 = vunpack.i.h.bf16 %v1532_v46  ;;  %v275_v46 = vld [vmem:[#allocation5 + $0x60] sm:$0xff] }
 0x188   :  { %v1527_v43 = vpop.permute.xlu1 %1526  ;;  %v152_v54 = vpop.permute.xlu2 %151 }
 0x189   :  { %v1528_v45 = vunpack.i.l.bf16 %v1527_v43  ;;  %v1529_v47 = vunpack.i.h.bf16 %v1527_v43 }
 0x190   :  { %v157_v53 = vpop.permute.xlu1 %156 }
 0x191   :  { %v218_v58 = vpop.permute.xlu2 %217 }
 0x192   :  { %v258_v21 = vadd.f32 %v257_v10, %v218_v58 }
 0x198   :  { %v1522_v41 = vpop.permute.xlu0 %1521 }
 0x199   :  { %v1523_v42 = vunpack.i.l.bf16 %v1522_v41  ;;  %v1524_v44 = vunpack.i.h.bf16 %v1522_v41  ;;  %v147_v55 = vpop.permute.xlu1 %146  ;;  %v213_v4 = vpop.permute.xlu2 %212 }
 0x19a   :  { %v255_v8 = vadd.f32 %v254_v63, %v213_v4 }
 0x19b   :  { %176 = vmatpush.msra.mxu1 %v1523_v42 }
 0x19d   :  { %177 = vmatpush.msra.mxu1 %v1524_v44 }
 0x19f   :  { %178 = vmatpush.msra.mxu1 %v1528_v45 }
 0x1a0   :  { %v1537_v49 = vpop.permute.xlu0 %1536 }
 0x1a1   :  { %179 = vmatpush.msra.mxu1 %v1529_v47  ;;  %v1538_v51 = vunpack.i.l.bf16 %v1537_v49  ;;  %v1539_v52 = vunpack.i.h.bf16 %v1537_v49  ;;  %v142_v59 = vpop.permute.xlu1 %141 }
 0x1a3   :  { %180 = vmatpush.msra.mxu1 %v1533_v48 }
 0x1a5   :  { %181 = vmatpush.msra.mxu1 %v1534_v50 }
 0x1a7   :  { %182 = vmatpush.msra.mxu1 %v1538_v51 }
 0x1a8   :  { %v223_v56 = vpop.permute.xlu0 %222 }
 0x1a9   :  { %183 = vmatpush.msra.mxu1 %v1539_v52  ;;  %v261_v26 = vadd.f32 %v260_v22, %v223_v56 }
 0x1aa   :  { %1458 = vmatmul.msk.f32.vlgmr.msra.gmra.mxu1 %vm159_vm2, %v119_v40 }
 0x1b0   :  { %v208_v62 = vpop.permute.xlu0 %207 }
 0x1b1   :  { %v252_v2 = vadd.f32 %v251_v57, %v208_v62 }
 0x1b2   :  { %1459 = vmatmul.msk.f32.gmra.mxu1 %vm159_vm2, %v120_v34  ;;  %v276_v34 = vld [vmem:[#allocation5 + $0x68] sm:$0xff] }
 0x1ba   :  { %1460 = vmatmul.msk.f32.gmra.mxu1 %vm159_vm2, %v121_v38 }
 0x1c2   :  { %1461 = vmatmul.msk.f32.gmra.mxu1 %vm159_vm2, %v122_v31 }
 0x227   :  { %v185_v60 = vpop.f32.mrf.mxu1 }
 0x228   :  { %v186_v61 = vadd.f32 %v185_v60, %v142_v59 }
 0x22a   :  { %v197_v1 = vmax.f32 %v186_v61, 0.0 }
 0x22c   :  { %v263_v6 = vadd.f32 %v252_v2, %v197_v1  ;;  %v363_v2 = vld [vmem:[#allocation5 + $0x98] sm:$0xff] }
 0x22e   :  { %v267_v11 = vmax.f32 %v263_v6, 0.0 }
 0x22f   :  { %v188_v5 = vpop.f32.mrf.mxu1 }
 0x230   :  { %v189_v7 = vadd.f32 %v188_v5, %v147_v55  ;;  %v1870_v16 = vmul.f32 %v1851_v15, %v267_v11  ;;  %v360_v11 = vld [vmem:[#allocation5 + $0x80] sm:$0xff] }
 0x232   :  { %v198_v9 = vmax.f32 %v189_v7, 0.0 }
 0x234   :  { %v264_v12 = vadd.f32 %v255_v8, %v198_v9 }
 0x236   :  { %v268_v13 = vmax.f32 %v264_v12, 0.0  ;;  %v362_v12 = vld [vmem:[#allocation5 + $0x90] sm:$0xff] }
 0x237   :  { %v191_v14 = vpop.f32.mrf.mxu1 }
 0x238   :  { %v1873_v17 = vmul.f32 %v1851_v15, %v268_v13  ;;  %v192_v18 = vadd.f32 %v191_v14, %v152_v54  ;;  %v361_v13 = vld [vmem:[#allocation5 + $0x88] sm:$0xff] }
 0x23a   :  { %v1549_v19 = vpack.i.bf16 %v1870_v16, %v1873_v17  ;;  %v199_v20 = vmax.f32 %v192_v18, 0.0 }
 0x23c   :  { %1550 = vrot.lane.b32.xlu2 %v1549_v19, %s1806_s1  ;;  %v265_v24 = vadd.f32 %v258_v21, %v199_v20 }
 0x23e   :  { %v269_v28 = vmax.f32 %v265_v24, 0.0 }
 0x23f   :  { %v194_v23 = vpop.f32.mrf.mxu1 }
 0x240   :  { %v195_v25 = vadd.f32 %v194_v23, %v157_v53  ;;  %v1879_v31 = vmul.f32 %v1851_v15, %v269_v28 }
 0x242   :  { %v200_v27 = vmax.f32 %v195_v25, 0.0 }
 0x244   :  { %v266_v29 = vadd.f32 %v261_v26, %v200_v27  ;;  %312 = vperm.xlu2 %1564, %v278_v39  }
 0x246   :  { %v270_v30 = vmax.f32 %v266_v29, 0.0 }
 0x248   :  { %v1882_v32 = vmul.f32 %v1851_v15, %v270_v30 }
 0x24a   :  { %327 = vmatpush.msra.mxu3 %v1882_v32  ;;  %v1554_v33 = vpack.i.bf16 %v1879_v31, %v1882_v32 }
 0x24c   :  { %1555 = vrot.lane.b32.xlu0 %v1554_v33, %s1810_s21  ;;  %1545 = vrot.lane.b32.xlu1 %v1554_v33, %s1806_s1 }
 0x24d   :  { %328 = vmatpush.msra.mxu3 %v1879_v31  ;;  %297 = vperm.xlu2 %1564, %v275_v46  }
 0x24f   :  { %329 = vmatpush.msra.mxu3 %v1873_v17 }
 0x251   :  { %330 = vmatpush.msra.mxu3 %v1870_v16 }
 0x254   :  { %1560 = vrot.lane.b32.xlu1 %v1549_v19, %s1810_s21  ;;  %307 = vperm.xlu0 %1565, %v277_v35  }
 0x25c   :  { %302 = vperm.xlu1 %1540, %v276_v34  }
 0x296   :  { %v1551_v38 = vpop.permute.xlu2 %1550 }
 0x297   :  { %v1552_v41 = vunpack.i.l.bf16 %v1551_v38  ;;  %v1553_v43 = vunpack.i.h.bf16 %v1551_v38 }
 0x29e   :  { %v313_v50 = vpop.permute.xlu2 %312 }
 0x2a7   :  { %v298_v52 = vpop.permute.xlu2 %297 }
 0x2be   :  { %v1546_v36 = vpop.permute.xlu1 %1545  ;;  %v1556_v42 = vpop.permute.xlu0 %1555 }
 0x2bf   :  { %v1547_v37 = vunpack.i.l.bf16 %v1546_v36  ;;  %v1548_v40 = vunpack.i.h.bf16 %v1546_v36  ;;  %v1557_v44 = vunpack.i.l.bf16 %v1556_v42  ;;  %v1558_v47 = vunpack.i.h.bf16 %v1556_v42 }
 0x2c1   :  { %331 = vmatpush.msra.mxu3 %v1547_v37 }
 0x2c3   :  { %332 = vmatpush.msra.mxu3 %v1548_v40 }
 0x2c5   :  { %333 = vmatpush.msra.mxu3 %v1552_v41 }
 0x2c6   :  { %v1561_v45 = vpop.permute.xlu1 %1560  ;;  %v308_v63 = vpop.permute.xlu0 %307 }
 0x2c7   :  { %334 = vmatpush.msra.mxu3 %v1553_v43  ;;  %v1562_v48 = vunpack.i.l.bf16 %v1561_v45  ;;  %v1563_v49 = vunpack.i.h.bf16 %v1561_v45 }
 0x2c9   :  { %335 = vmatpush.msra.mxu3 %v1557_v44 }
 0x2cb   :  { %336 = vmatpush.msra.mxu3 %v1558_v47 }
 0x2cd   :  { %337 = vmatpush.msra.mxu3 %v1562_v48 }
 0x2ce   :  { %v303_v54 = vpop.permute.xlu1 %302 }
 0x2cf   :  { %338 = vmatpush.msra.mxu3 %v1563_v49 }
 0x2d0   :  { %1466 = vmatmul.msk.f32.vlgmr.msra.gmra.mxu3 %vm159_vm2, %v275_v46 }
 0x2d8   :  { %1467 = vmatmul.msk.f32.gmra.mxu3 %vm159_vm2, %v276_v34 }
 0x2e0   :  { %1468 = vmatmul.msk.f32.gmra.mxu3 %vm159_vm2, %v277_v35 }
 0x2e8   :  { %1469 = vmatmul.msk.f32.gmra.mxu3 %vm159_vm2, %v278_v39 }
 0x353   :  { %v340_v51 = vpop.f32.mrf.mxu3 }
 0x354   :  { %v341_v53 = vadd.f32 %v340_v51, %v298_v52  ;;  %v456_v52 = vld [vmem:[#allocation5 + $0xb8] sm:$0xff] }
 0x356   :  { %v352_v56 = vmax.f32 %v341_v53, 0.0 }
 0x358   :  { %v356_v59 = vmul.f32 %v1851_v15, %v352_v56 }
 0x35b   :  { %v343_v55 = vpop.f32.mrf.mxu3 }
 0x35c   :  { %v344_v57 = vadd.f32 %v343_v55, %v303_v54 }
 0x35e   :  { %v353_v58 = vmax.f32 %v344_v57, 0.0 }
 0x360   :  { %v357_v60 = vmul.f32 %v1851_v15, %v353_v58 }
 0x362   :  { %v1571_v61 = vpack.i.bf16 %v356_v59, %v357_v60 }
 0x363   :  { %v346_v62 = vpop.f32.mrf.mxu3 }
 0x364   :  { %1572 = vrot.lane.b32.xlu2 %v1571_v61, %s1806_s1  ;;  %v347_v1 = vadd.f32 %v346_v62, %v308_v63 }
 0x366   :  { %v354_v5 = vmax.f32 %v347_v1, 0.0 }
 0x368   :  { %v358_v8 = vmul.f32 %v1851_v15, %v354_v5 }
 0x36b   :  { %v349_v4 = vpop.f32.mrf.mxu3 }
 0x36c   :  { %v350_v6 = vadd.f32 %v349_v4, %v313_v50  ;;  %397 = vperm.xlu2 %1564, %v363_v2  }
 0x36e   :  { %v355_v7 = vmax.f32 %v350_v6, 0.0 }
 0x370   :  { %v359_v9 = vmul.f32 %v1851_v15, %v355_v7 }
 0x372   :  { %412 = vmatpush.msrb.mxu2 %v359_v9  ;;  %v1576_v10 = vpack.i.bf16 %v358_v8, %v359_v9 }
 0x374   :  { %1577 = vrot.lane.b32.xlu0 %v1576_v10, %s1810_s21  ;;  %1567 = vrot.lane.b32.xlu1 %v1576_v10, %s1806_s1 }
 0x375   :  { %413 = vmatpush.msrb.mxu2 %v358_v8  ;;  %382 = vperm.xlu2 %1564, %v360_v11  }
 0x377   :  { %414 = vmatpush.msrb.mxu2 %v357_v60  ;;  %v454_v60 = vld [vmem:[#allocation5 + $0xa8] sm:$0xff] }
 0x379   :  { %415 = vmatpush.msrb.mxu2 %v356_v59 }
 0x37c   :  { %392 = vperm.xlu0 %1565, %v362_v12   ;;  %1582 = vrot.lane.b32.xlu1 %v1571_v61, %s1810_s21 }
 0x384   :  { %387 = vperm.xlu1 %1540, %v361_v13  }
 0x3be   :  { %v1573_v19 = vpop.permute.xlu2 %1572 }
 0x3bf   :  { %v1574_v21 = vunpack.i.l.bf16 %v1573_v19  ;;  %v1575_v23 = vunpack.i.h.bf16 %v1573_v19 }
 0x3c6   :  { %v398_v29 = vpop.permute.xlu2 %397 }
 0x3cf   :  { %v383_v30 = vpop.permute.xlu2 %382 }
 0x3e6   :  { %v1568_v14 = vpop.permute.xlu1 %1567  ;;  %v1578_v22 = vpop.permute.xlu0 %1577 }
 0x3e7   :  { %v1569_v18 = vunpack.i.l.bf16 %v1568_v14  ;;  %v1570_v20 = vunpack.i.h.bf16 %v1568_v14  ;;  %v1579_v24 = vunpack.i.l.bf16 %v1578_v22  ;;  %v1580_v26 = vunpack.i.h.bf16 %v1578_v22 }
 0x3e9   :  { %416 = vmatpush.msrb.mxu2 %v1569_v18 }
 0x3eb   :  { %417 = vmatpush.msrb.mxu2 %v1570_v20 }
 0x3ed   :  { %418 = vmatpush.msrb.mxu2 %v1574_v21 }
 0x3ee   :  { %v1583_v25 = vpop.permute.xlu1 %1582  ;;  %v393_v44 = vpop.permute.xlu0 %392 }
 0x3ef   :  { %419 = vmatpush.msrb.mxu2 %v1575_v23  ;;  %v1584_v27 = vunpack.i.l.bf16 %v1583_v25  ;;  %v1585_v28 = vunpack.i.h.bf16 %v1583_v25 }
 0x3f1   :  { %420 = vmatpush.msrb.mxu2 %v1579_v24 }
 0x3f3   :  { %421 = vmatpush.msrb.mxu2 %v1580_v26 }
 0x3f5   :  { %422 = vmatpush.msrb.mxu2 %v1584_v27 }
 0x3f6   :  { %v388_v36 = vpop.permute.xlu1 %387 }
 0x3f7   :  { %423 = vmatpush.msrb.mxu2 %v1585_v28 }
 0x3f8   :  { %1470 = vmatmul.msk.f32.vlgmr.msrb.gmra.mxu2 %vm159_vm2, %v360_v11 }
 0x400   :  { %1471 = vmatmul.msk.f32.gmra.mxu2 %vm159_vm2, %v361_v13 }
 0x408   :  { %1472 = vmatmul.msk.f32.gmra.mxu2 %vm159_vm2, %v362_v12 }
 0x410   :  { %1473 = vmatmul.msk.f32.gmra.mxu2 %vm159_vm2, %v363_v2 }
 0x47b   :  { %v425_v33 = vpop.f32.mrf.mxu2 }
 0x47c   :  { %v426_v34 = vadd.f32 %v425_v33, %v383_v30 }
 0x47e   :  { %v437_v35 = vmax.f32 %v426_v34, 0.0 }
 0x480   :  { %v441_v38 = vadd.f32 %v437_v35, %v1870_v16 }
 0x482   :  { %v445_v41 = vmax.f32 %v441_v38, 0.0 }
 0x483   :  { %v428_v37 = vpop.f32.mrf.mxu2 }
 0x484   :  { %v429_v39 = vadd.f32 %v428_v37, %v388_v36  ;;  %v1912_v46 = vmul.f32 %v1851_v15, %v445_v41  ;;  %v539_v41 = vld [vmem:[#allocation5 + $0xc8] sm:$0xff] }
 0x486   :  { %v438_v40 = vmax.f32 %v429_v39, 0.0  ;;  %v538_v39 = vld [vmem:[#allocation5 + $0xc0] sm:$0xff] }
 0x488   :  { %v442_v42 = vadd.f32 %v438_v40, %v1873_v17  ;;  %v540_v40 = vld [vmem:[#allocation5 + $0xd0] sm:$0xff] }
 0x48a   :  { %v446_v43 = vmax.f32 %v442_v42, 0.0 }
 0x48b   :  { %v431_v45 = vpop.f32.mrf.mxu2 }
 0x48c   :  { %v1915_v47 = vmul.f32 %v1851_v15, %v446_v43  ;;  %v432_v48 = vadd.f32 %v431_v45, %v393_v44 }
 0x48e   :  { %v1591_v49 = vpack.i.bf16 %v1912_v46, %v1915_v47  ;;  %v439_v50 = vmax.f32 %v432_v48, 0.0 }
 0x490   :  { %1592 = vrot.lane.b32.xlu1 %v1591_v49, %s1810_s21  ;;  %v443_v51 = vadd.f32 %v439_v50, %v1879_v31  ;;  %v453_v31 = vld [vmem:[#allocation5 + $0xa0] sm:$0xff] }
 0x492   :  { %v447_v54 = vmax.f32 %v443_v51, 0.0 }
 0x493   :  { %v434_v16 = vpop.f32.mrf.mxu2 }
 0x494   :  { %v435_v17 = vadd.f32 %v434_v16, %v398_v29  ;;  %v1923_v57 = vmul.f32 %v1851_v15, %v447_v54  ;;  %v541_v29 = vld [vmem:[#allocation5 + $0xd8] sm:$0xff] }
 0x496   :  { %v440_v53 = vmax.f32 %v435_v17, 0.0 }
 0x498   :  { %v444_v55 = vadd.f32 %v440_v53, %v1882_v32  ;;  %490 = vperm.xlu1 %1540, %v456_v52   ;;  %v455_v32 = vld [vmem:[#allocation5 + $0xb0] sm:$0xff] }
 0x49a   :  { %v448_v56 = vmax.f32 %v444_v55, 0.0 }
 0x49c   :  { %v1926_v58 = vmul.f32 %v1851_v15, %v448_v56 }
 0x49e   :  { %505 = vmatpush.msrb.mxu0 %v1926_v58  ;;  %v1596_v59 = vpack.i.bf16 %v1923_v57, %v1926_v58 }
 0x4a0   :  { %1597 = vrot.lane.b32.xlu2 %v1596_v59, %s1804_s20  ;;  %1587 = vrot.lane.b32.xlu0 %v1596_v59, %s1810_s21 }
 0x4a1   :  { %506 = vmatpush.msrb.mxu0 %v1923_v57  ;;  %475 = vperm.xlu1 %1540, %v453_v31  }
 0x4a3   :  { %507 = vmatpush.msrb.mxu0 %v1915_v47 }
 0x4a5   :  { %508 = vmatpush.msrb.mxu0 %v1912_v46 }
 0x4a8   :  { %485 = vperm.xlu2 %1564, %v455_v32   ;;  %1602 = vrot.lane.b32.xlu0 %v1591_v49, %s1804_s20 }
 0x4b0   :  { %480 = vperm.xlu0 %1565, %v454_v60  }
 0x4fa   :  { %v1598_v4 = vpop.permute.xlu2 %1597 }
 0x4fb   :  { %v1599_v6 = vunpack.i.l.bf16 %v1598_v4  ;;  %v1600_v8 = vunpack.i.h.bf16 %v1598_v4 }
 0x502   :  { %v1593_v63 = vpop.permute.xlu1 %1592  ;;  %v486_v27 = vpop.permute.xlu2 %485 }
 0x503   :  { %v1594_v2 = vunpack.i.l.bf16 %v1593_v63  ;;  %v1595_v5 = vunpack.i.h.bf16 %v1593_v63  ;;  %v631_v63 = vld [vmem:[#allocation5 + $0xe0] sm:$0xff] }
 0x50a   :  { %v491_v11 = vpop.permute.xlu1 %490 }
 0x512   :  { %v1588_v61 = vpop.permute.xlu0 %1587 }
 0x513   :  { %v1589_v62 = vunpack.i.l.bf16 %v1588_v61  ;;  %v1590_v1 = vunpack.i.h.bf16 %v1588_v61  ;;  %v476_v13 = vpop.permute.xlu1 %475 }
 0x515   :  { %509 = vmatpush.msrb.mxu0 %v1589_v62 }
 0x517   :  { %510 = vmatpush.msrb.mxu0 %v1590_v1 }
 0x519   :  { %511 = vmatpush.msrb.mxu0 %v1594_v2 }
 0x51a   :  { %v1603_v7 = vpop.permute.xlu0 %1602 }
 0x51b   :  { %512 = vmatpush.msrb.mxu0 %v1595_v5  ;;  %v1604_v9 = vunpack.i.l.bf16 %v1603_v7  ;;  %v1605_v10 = vunpack.i.h.bf16 %v1603_v7 }
 0x51d   :  { %513 = vmatpush.msrb.mxu0 %v1599_v6 }
 0x51f   :  { %514 = vmatpush.msrb.mxu0 %v1600_v8 }
 0x521   :  { %515 = vmatpush.msrb.mxu0 %v1604_v9 }
 0x522   :  { %v481_v18 = vpop.permute.xlu0 %480 }
 0x523   :  { %516 = vmatpush.msrb.mxu0 %v1605_v10 }
 0x524   :  { %1474 = vmatmul.msk.f32.vlgmr.msrb.gmra.mxu0 %vm159_vm2, %v453_v31 }
 0x52c   :  { %1475 = vmatmul.msk.f32.gmra.mxu0 %vm159_vm2, %v454_v60 }
 0x534   :  { %1476 = vmatmul.msk.f32.gmra.mxu0 %vm159_vm2, %v455_v32 }
 0x53c   :  { %1477 = vmatmul.msk.f32.gmra.mxu0 %vm159_vm2, %v456_v52 }
 0x5a1   :  { %v518_v12 = vpop.f32.mrf.mxu0 }
 0x5a2   :  { %v519_v14 = vadd.f32 %v518_v12, %v476_v13 }
 0x5a4   :  { %v530_v20 = vmax.f32 %v519_v14, 0.0 }
 0x5a6   :  { %v534_v23 = vmul.f32 %v1851_v15, %v530_v20 }
 0x5a9   :  { %v521_v19 = vpop.f32.mrf.mxu0 }
 0x5aa   :  { %v522_v21 = vadd.f32 %v521_v19, %v481_v18 }
 0x5ac   :  { %v531_v22 = vmax.f32 %v522_v21, 0.0 }
 0x5ae   :  { %v535_v24 = vmul.f32 %v1851_v15, %v531_v22 }
 0x5b0   :  { %v1611_v25 = vpack.i.bf16 %v534_v23, %v535_v24 }
 0x5b1   :  { %v524_v26 = vpop.f32.mrf.mxu0 }
 0x5b2   :  { %1612 = vrot.lane.b32.xlu0 %v1611_v25, %s1810_s21  ;;  %v525_v28 = vadd.f32 %v524_v26, %v486_v27 }
 0x5b4   :  { %v532_v33 = vmax.f32 %v525_v28, 0.0 }
 0x5b6   :  { %v536_v36 = vmul.f32 %v1851_v15, %v532_v33 }
 0x5b9   :  { %v527_v30 = vpop.f32.mrf.mxu0 }
 0x5ba   :  { %v528_v34 = vadd.f32 %v527_v30, %v491_v11  ;;  %575 = vperm.xlu0 %1565, %v541_v29  }
 0x5bc   :  { %v533_v35 = vmax.f32 %v528_v34, 0.0 }
 0x5be   :  { %v537_v37 = vmul.f32 %v1851_v15, %v533_v35 }
 0x5c0   :  { %590 = vmatpush.msrb.mxu1 %v537_v37  ;;  %v1616_v38 = vpack.i.bf16 %v536_v36, %v537_v37  ;;  %v1644_v37 = vld [vmem:[#allocation5 + $0x118] ss:$0 sm:$0xff] }
 0x5c2   :  { %1617 = vrot.lane.b32.xlu1 %v1616_v38, %s1804_s20  ;;  %1607 = vrot.lane.b32.xlu2 %v1616_v38, %s1810_s21  ;;  %v1813_v38 = vmov 32  }
 0x5c3   :  { %591 = vmatpush.msrb.mxu1 %v536_v36  ;;  %560 = vperm.xlu0 %1565, %v538_v39   ;;  %v706_v36 = vld [vmem:[#allocation5 + $0xf0] sm:$0xff] }
 0x5c5   :  { %592 = vmatpush.msrb.mxu1 %v535_v24 }
 0x5c7   :  { %593 = vmatpush.msrb.mxu1 %v534_v23 }
 0x5ca   :  { %570 = vperm.xlu1 %1540, %v540_v40   ;;  %1622 = vrot.lane.b32.xlu2 %v1611_v25, %s1804_s20 }
 0x5cb   :  { %645 = vrot.lane.b32.xlu0 %v631_v63, %s1811_s22 }
 0x5d2   :  { %565 = vperm.xlu2 %1564, %v539_v41  }
 0x5da   :  { %1637 = vset.pattern.permute.xlu2 %v1813_v38 }
 0x61c   :  { %v1608_v42 = vpop.permute.xlu2 %1607 }
 0x61d   :  { %v1609_v43 = vunpack.i.l.bf16 %v1608_v42  ;;  %v1610_v44 = vunpack.i.h.bf16 %v1608_v42 }
 0x61f   :  { %594 = vmatpush.msrb.mxu1 %v1609_v43 }
 0x621   :  { %595 = vmatpush.msrb.mxu1 %v1610_v44 }
 0x624   :  { %v1613_v45 = vpop.permute.xlu0 %1612  ;;  %v1623_v51 = vpop.permute.xlu2 %1622 }
 0x625   :  { %v1614_v48 = vunpack.i.l.bf16 %v1613_v45  ;;  %v1615_v49 = vunpack.i.h.bf16 %v1613_v45  ;;  %v1624_v52 = vunpack.i.l.bf16 %v1623_v51  ;;  %v1625_v53 = vunpack.i.h.bf16 %v1623_v51 }
 0x627   :  { %596 = vmatpush.msrb.mxu1 %v1614_v48 }
 0x629   :  { %597 = vmatpush.msrb.mxu1 %v1615_v49 }
 0x62c   :  { %v576_v54 = vpop.permute.xlu0 %575  ;;  %v566_v32 = vpop.permute.xlu2 %565 }
 0x634   :  { %v1618_v50 = vpop.permute.xlu1 %1617 }
 0x635   :  { %v1619_v16 = vunpack.i.l.bf16 %v1618_v50  ;;  %v1620_v17 = vunpack.i.h.bf16 %v1618_v50  ;;  %v561_v55 = vpop.permute.xlu0 %560 }
 0x637   :  { %598 = vmatpush.msrb.mxu1 %v1619_v16 }
 0x639   :  { %599 = vmatpush.msrb.mxu1 %v1620_v17 }
 0x63b   :  { %600 = vmatpush.msrb.mxu1 %v1624_v52 }
 0x63c   :  { %v571_v6 = vpop.permute.xlu1 %570 }
 0x63d   :  { %601 = vmatpush.msrb.mxu1 %v1625_v53  ;;  %v646_v28 = vpop.permute.xlu0 %645 }
 0x63e   :  { %1478 = vmatmul.msk.f32.vlgmr.msrb.gmra.mxu1 %vm159_vm2, %v538_v39 }
 0x646   :  { %1479 = vmatmul.msk.f32.gmra.mxu1 %vm159_vm2, %v539_v41 }
 0x64e   :  { %1480 = vmatmul.msk.f32.gmra.mxu1 %vm159_vm2, %v540_v40 }
 0x656   :  { %1481 = vmatmul.msk.f32.gmra.mxu1 %vm159_vm2, %v541_v29  ;;  %vm861_vm2 = vcmask 7168  }
 0x6bb   :  { %v603_v56 = vpop.f32.mrf.mxu1 }
 0x6bc   :  { %v604_v59 = vadd.f32 %v603_v56, %v561_v55 }
 0x6be   :  { %v615_v31 = vmax.f32 %v604_v59, 0.0 }
 0x6c0   :  { %v619_v61 = vadd.f32 %v615_v31, %v1912_v46 }
 0x6c2   :  { %v623_v2 = vmax.f32 %v619_v61, 0.0 }
 0x6c3   :  { %v606_v60 = vpop.f32.mrf.mxu1 }
 0x6c4   :  { %v607_v62 = vadd.f32 %v606_v60, %v566_v32  ;;  %v627_v8 = vmul.f32 %v1851_v15, %v623_v2 }
 0x6c6   :  { %v616_v1 = vmax.f32 %v607_v62, 0.0 }
 0x6c8   :  { %v620_v4 = vadd.f32 %v616_v1, %v1915_v47 }
 0x6ca   :  { %v624_v5 = vmax.f32 %v620_v4, 0.0 }
 0x6cb   :  { %v609_v7 = vpop.f32.mrf.mxu1 }
 0x6cc   :  { %v628_v9 = vmul.f32 %v1851_v15, %v624_v5  ;;  %v610_v10 = vadd.f32 %v609_v7, %v571_v6 }
 0x6ce   :  { %v1631_v11 = vpack.i.bf16 %v627_v8, %v628_v9  ;;  %v617_v12 = vmax.f32 %v610_v10, 0.0 }
 0x6d0   :  { %1632 = vrot.lane.b32.xlu2 %v1631_v11, %s1804_s20  ;;  %v621_v13 = vadd.f32 %v617_v12, %v1923_v57  ;;  %v672_v57 = vld [vmem:[#allocation5 + $0xe8] sm:$0xff] }
 0x6d1   :  { %680 = vrot.lane.b32.xlu0 %v672_v57, %s1812_s23 }
 0x6d2   :  { %v625_v19 = vmax.f32 %v621_v13, 0.0 }
 0x6d3   :  { %v612_v46 = vpop.f32.mrf.mxu1 }
 0x6d4   :  { %v613_v14 = vadd.f32 %v612_v46, %v576_v54  ;;  %v629_v21 = vmul.f32 %v1851_v15, %v625_v19 }
 0x6d6   :  { %v618_v18 = vmax.f32 %v613_v14, 0.0 }
 0x6d8   :  { %v622_v47 = vadd.f32 %v618_v18, %v1926_v58 }
 0x6d9   :  { %784 = vrot.lane.b32.xlu0 %v1644_v37, %s1814_s24 }
 0x6da   :  { %v626_v20 = vmax.f32 %v622_v47, 0.0 }
 0x6dc   :  { %v630_v22 = vmul.f32 %v1851_v15, %v626_v20 }
 0x6de   :  { %658 = vmatpush.msrb.mxu3 %v630_v22  ;;  %727 = vmatpush.msra.mxu2 %v630_v22  ;;  %v1626_v23 = vpack.i.bf16 %v629_v21, %v630_v22 }
 0x6e0   :  { %1627 = vrot.lane.b32.xlu1 %v1626_v23, %s1804_s20  ;;  %659 = vmatpush.msrb.mxu3 %v629_v21 }
 0x6e1   :  { %728 = vmatpush.msra.mxu2 %v629_v21 }
 0x6e2   :  { %660 = vmatpush.msrb.mxu3 %v628_v9 }
 0x6e3   :  { %729 = vmatpush.msra.mxu2 %v628_v9 }
 0x6e4   :  { %661 = vmatpush.msrb.mxu3 %v627_v8 }
 0x6e5   :  { %730 = vmatpush.msra.mxu2 %v627_v8 }
 0x6e6   :  { %1484 = vmatmul.msk.f32.vlgmr.msra.gmra.mxu2 %vm712_vm4, %v706_v36 }
 0x6e8   :  { %642 = vperm.xlu1 %1540, %v631_v63  }
 0x6f0   :  { %1636 = vset.pattern.permute.xlu1 %v1807_v3 }
 0x6f1   :  { %677 = vperm.xlu1 %1636, %v672_v57  }
 0x72a   :  { %v1633_v25 = vpop.permute.xlu2 %1632 }
 0x72b   :  { %v1634_v27 = vunpack.i.l.bf16 %v1633_v25  ;;  %v1635_v29 = vunpack.i.h.bf16 %v1633_v25 }
 0x743   :  { %v681_v39 = vpop.permute.xlu0 %680 }
 0x74b   :  { %v785_v51 = vpop.permute.xlu0 %784 }
 0x752   :  { %v1628_v58 = vpop.permute.xlu1 %1627 }
 0x753   :  { %v1629_v24 = vunpack.i.l.bf16 %v1628_v58  ;;  %v1630_v26 = vunpack.i.h.bf16 %v1628_v58 }
 0x755   :  { %662 = vmatpush.msrb.mxu3 %v1629_v24 }
 0x757   :  { %663 = vmatpush.msrb.mxu3 %v1630_v26 }
 0x759   :  { %664 = vmatpush.msrb.mxu3 %v1634_v27 }
 0x75a   :  { %v643_v30 = vpop.permute.xlu1 %642 }
 0x75b   :  { %665 = vmatpush.msrb.mxu3 %v1635_v29 }
 0x75c   :  { %1482 = vmatmul.msk.f32.vlgmr.msrb.gmra.mxu3 %vm647_vm3, %v646_v28 }
 0x763   :  { %v678_v41 = vpop.permute.xlu1 %677 }
 0x769   :  { %v732_v42 = vpop.f32.mrf.mxu2 }
 0x7df   :  { %v667_v33 = vpop.f32.mrf.mxu3 }
 0x7e0   :  { %v668_v3 = vadd.f32 %v667_v33, %v643_v30 }
 0x7e2   :  { %v670_v34 = vmax.f32 %v668_v3, 0.0 }
 0x7e4   :  { %v671_v35 = vmul.f32 %v1851_v15, %v670_v34 }
 0x7e6   :  { %673 = vrot.lane.b32.xlu2 %v671_v35, %s1804_s20  ;;  %699 = vmatpush.msra.mxu3 %v671_v35  ;;  %v1722_v35 = vld [vmem:[#allocation2] sm:$0xff] }
 0x7ee   :  { %709 = vperm.xlu2 %1637, %v706_v36  }
 0x840   :  { %v674_v40 = vpop.permute.xlu2 %673 }
 0x841   :  { %700 = vmatpush.msra.mxu3 %v674_v40 }
 0x842   :  { %1483 = vmatmul.msk.f32.vlgmr.msra.gmra.mxu3 %vm682_vm5, %v681_v39 }
 0x848   :  { %v710_v43 = vpop.permute.xlu2 %709 }
 0x849   :  { %v733_v48 = vadd.f32 %v732_v42, %v710_v43 }
 0x8c5   :  { %v702_v44 = vpop.f32.mrf.mxu3 }
 0x8c6   :  { %v703_v45 = vadd.f32 %v702_v44, %v678_v41 }
 0x8c8   :  { %v705_v49 = vmax.f32 %v703_v45, 0.0 }
 0x8ca   :  { %v735_v50 = vadd.f32 %v733_v48, %v705_v49 }
 0x8cc   :  { %v736_v16 = vmax.f32 %v735_v50, 0.0 }
 0x8ce   :  { %v1970_v17 = vmul.f32 %v1851_v15, %v736_v16 }
 0x8d0   :  { %v787_v52 = vmul.f32 %v785_v51, %v1970_v17  ;;  %v740_v53 = vmul.f32 %v1644_v37, %v1970_v17 }
 0x8d2   :  { %789 = vrot.lane.b32.xlu1 %v787_v52, %s1814_s24  ;;  %v742_v54 = vsel %vm741_vm6, %v740_v53, 0.0 }
 0x8d3   :  { %743 = vadd.xlane.f32.xlu0 %v742_v54 }
 0x8da   :  { %855 = vrot.lane.b32.xlu1 %v1841_v0, %s1811_s22 }
 0x944   :  { %v790_v55 = vpop.permute.xlu1 %789 }
 0x945   :  { %v792_v56 = vsel %vm741_vm6, %v790_v55, 0.0 }
 0x946   :  { %793 = vadd.xlane.f32.xlu2 %v792_v56  ;;  %v744_v20 = vpop.xlane.xlu0 %743 }
 0x947   :  { %v745_v23 = vrot.slane %v744_v20, 4 }
 0x949   :  { %v746_v24 = vmax.f32 %v744_v20, %v745_v23 }
 0x94b   :  { %v747_v27 = vrot.slane %v746_v24, 2 }
 0x94d   :  { %v748_v30 = vmax.f32 %v746_v24, %v747_v27 }
 0x94f   :  { %v749_v3 = vrot.slane %v748_v30, 1 }
 0x951   :  { %v750_v34 = vmax.f32 %v748_v30, %v749_v3 }
 0x953   :  { %v751_v36 = vsub.f32 %v744_v20, %v750_v34 }
 0x955   :  { %v752_v37 = vmul.f32 1.442695, %v751_v36 }
 0x9b9   :  { %v794_v59 = vpop.xlane.xlu2 %793 }
 0x9ba   :  { %v795_v15 = vrot.slane %v794_v59, 4 }
 0x9bc   :  { %v796_v31 = vmax.f32 %v794_v59, %v795_v15 }
 0x9be   :  { %v797_v32 = vrot.slane %v796_v31, 2 }
 0x9c0   :  { %v798_v60 = vmax.f32 %v796_v31, %v797_v32 }
 0x9c2   :  { %v799_v61 = vrot.slane %v798_v60, 1 }
 0x9c4   :  { %v800_v62 = vmax.f32 %v798_v60, %v799_v61 }
 0x9c6   :  { %v801_v63 = vsub.f32 %v794_v59, %v800_v62  ;;  %v864_v59 = vlaneseq }
 0x9c8   :  { %v802_v1 = vmul.f32 1.442695, %v801_v63  ;;  %v865_v15 = vshrl.u32 %v864_v59, 7  ;;  %v856_v63 = vpop.permute.xlu1 %855 }
 0x9ca   :  { %1650 = vpow2.f32 %v802_v1  ;;  %1638 = vset.pattern.permute.xlu2 %v865_v15  ;;  %1639 = vset.pattern.permute.xlu0 %v865_v15 }
 0x9cb   :  { %1640 = vset.pattern.permute.xlu1 %v865_v15 }
 0x9d0   :  { %v1651_v2 = vpop.eup %1650 }
 0x9d1   :  { %v804_v4 = vrot.slane %v1651_v2, 4 }
 0x9d3   :  { %v805_v5 = vadd.f32 %v1651_v2, %v804_v4  ;;  %v1645_v4 = vld [vmem:[#allocation5 + $0x119] ss:$0 sm:$0xff] }
 0x9d5   :  { %v806_v6 = vrot.slane %v805_v5, 2 }
 0x9d7   :  { %v807_v7 = vadd.f32 %v806_v6, %v805_v5 }
 0x9d9   :  { %v808_v0 = vrot.slane %v807_v7, 1 }
 0x9db   :  { %v809_v8 = vadd.f32 %v808_v0, %v807_v7 }
 0x9dd   :  { %1652 = vrcp.f32 %v809_v8  ;;  %v821_v12 = vand.u32 2147483648, %v809_v8  ;;  %v819_v13 = vand.u32 2147483647, %v809_v8  ;;  %vm815_vm8 = vweird.f32 %v809_v8 }
 0x9de   :  { %1654 = vpow2.f32 %v752_v37 }
 0x9df   :  { %v822_v18 = vor.u32 1.1754944e-38, %v821_v12  ;;  %vm820_vm10 = vcmp.eq.f32.partialorder %v819_v13, 8.507059e+37  ;;  %v1990_v12 = vld [vmem:[#allocation5 + $0x11b] ss:$0 sm:$0xff] }
 0x9e3   :  { %v1653_v9 = vpop.eup %1652 }
 0x9e4   :  { %v811_v10 = vmul.f32 %v1653_v9, %v809_v8  ;;  %vm816_vm7 = vweird.f32 %v1653_v9  ;;  %v1655_v38 = vpop.eup %1654 }
 0x9e5   :  { %vm817_vm9 = vmor %vm815_vm8, %vm816_vm7  ;;  %v754_v39 = vrot.slane %v1655_v38, 4 }
 0x9e6   :  { %v812_v11 = vsub.f32 1.0, %v811_v10 }
 0x9e7   :  { %v755_v40 = vadd.f32 %v1655_v38, %v754_v39  ;;  %v938_v39 = vld [vmem:[#allocation5 + $0x108] sm:$0xff] }
 0x9e8   :  { %v813_v46 = vmul.f32 %v1653_v9, %v812_v11  ;;  %v1647_v11 = vld [vmem:[#allocation5 + $0x11a] ss:$0 sm:$0xff] }
 0x9e9   :  { %v756_v41 = vrot.slane %v755_v40, 2 }
 0x9ea   :  { %v814_v14 = vadd.f32 %v1653_v9, %v813_v46  ;;  %v1648_v46 = vld [vmem:[#allocation5 + $0x11c] ss:$0 sm:$0xff] }
 0x9eb   :  { %v757_v42 = vadd.f32 %v756_v41, %v755_v40  ;;  %v937_v40 = vld [vmem:[#allocation5 + $0x100] sm:$0xff]  ;;  %v936_v41 = vld [vmem:[#allocation5 + $0xf8] sm:$0xff] }
 0x9ec   :  { %v818_v19 = vsel %vm817_vm9, %v1653_v9, %v814_v14 }
 0x9ed   :  { %v823_v47 = vsel %vm820_vm10, %v822_v18, %v818_v19  ;;  %v758_v43 = vrot.slane %v757_v42, 1 }
 0x9ee   :  { %v824_v21 = vmul.f32 %v1651_v2, %v823_v47 }
 0x9ef   :  { %v759_v44 = vadd.f32 %v758_v43, %v757_v42 }
 0x9f0   :  { %v825_v22 = vmul.f32 %v824_v21, %v1970_v17 }
 0x9f1   :  { %1656 = vrcp.f32 %v759_v44  ;;  %v771_v51 = vand.u32 2147483648, %v759_v44  ;;  %vm765_vm13 = vweird.f32 %v759_v44  ;;  %v769_v52 = vand.u32 2147483647, %v759_v44 }
 0x9f2   :  { %v827_v57 = vsel %vm826_vm11, %v825_v22, 0.0 }
 0x9f3   :  { %v828_v58 = vrot.slane %v827_v57, 4  ;;  %v772_v54 = vor.u32 1.1754944e-38, %v771_v51  ;;  %vm770_vm15 = vcmp.eq.f32.partialorder %v769_v52, 8.507059e+37 }
 0x9f5   :  { %v829_v25 = vadd.f32 %v828_v58, %v827_v57 }
 0x9f7   :  { %v830_v26 = vrot.slane %v829_v25, 2  ;;  %v1657_v45 = vpop.eup %1656 }
 0x9f8   :  { %v761_v48 = vmul.f32 %v1657_v45, %v759_v44  ;;  %vm766_vm12 = vweird.f32 %v1657_v45 }
 0x9f9   :  { %v831_v28 = vadd.f32 %v830_v26, %v829_v25  ;;  %vm767_vm14 = vmor %vm765_vm13, %vm766_vm12 }
 0x9fa   :  { %v762_v49 = vsub.f32 1.0, %v761_v48 }
 0x9fb   :  { %v832_v29 = vrot.slane %v831_v28, 1 }
 0x9fc   :  { %v763_v50 = vmul.f32 %v1657_v45, %v762_v49 }
 0x9fd   :  { %v833_v33 = vadd.f32 %v832_v29, %v831_v28 }
 0x9fe   :  { %v764_v16 = vadd.f32 %v1657_v45, %v763_v50 }
 0x9ff   :  { %835 = vrot.lane.b32.xlu1 %v833_v33, %s1814_s24 }
 0xa00   :  { %v768_v53 = vsel %vm767_vm14, %v1657_v45, %v764_v16 }
 0xa01   :  { %v773_v55 = vsel %vm770_vm15, %v772_v54, %v768_v53 }
 0xa02   :  { %v774_v56 = vmul.f32 %v1655_v38, %v773_v55  ;;  %v939_v38 = vld [vmem:[#allocation5 + $0x110] sm:$0xff] }
 0xa03   :  { %988 = vmatpush.msra.mxu0 %v939_v38  ;;  %1054 = vmatpush.msrb.mxu3 %v939_v38 }
 0xa04   :  { %v775_v31 = vmul.f32 %v774_v56, %v1970_v17  ;;  %1116 = vmatpush.msrb.mxu2 %v939_v38 }
 0xa05   :  { %989 = vmatpush.msra.mxu0 %v938_v39  ;;  %1055 = vmatpush.msrb.mxu3 %v938_v39 }
 0xa06   :  { %v776_v32 = vsel %vm741_vm6, %v775_v31, 0.0  ;;  %1117 = vmatpush.msrb.mxu2 %v938_v39 }
 0xa07   :  { %858 = vrot.lane.b32.xlu1 %v1722_v35, %s1815_s25  ;;  %v777_v60 = vrot.slane %v776_v32, 4  ;;  %990 = vmatpush.msra.mxu0 %v937_v40 }
 0xa08   :  { %1056 = vmatpush.msrb.mxu3 %v937_v40  ;;  %1118 = vmatpush.msrb.mxu2 %v937_v40 }
 0xa09   :  { %v778_v61 = vadd.f32 %v777_v60, %v776_v32  ;;  %991 = vmatpush.msra.mxu0 %v936_v41 }
 0xa0a   :  { %1057 = vmatpush.msrb.mxu3 %v936_v41  ;;  %1119 = vmatpush.msrb.mxu2 %v936_v41 }
 0xa0b   :  { %v779_v62 = vrot.slane %v778_v61, 2  ;;  %1178 = vmatpush.msrb.mxu0 %v939_v38 }
 0xa0c   :  { %1240 = vmatpush.msra.mxu3 %v939_v38  ;;  %1302 = vmatpush.msra.mxu2 %v939_v38 }
 0xa0d   :  { %v780_v1 = vadd.f32 %v779_v62, %v778_v61  ;;  %1179 = vmatpush.msrb.mxu0 %v938_v39 }
 0xa0e   :  { %1241 = vmatpush.msra.mxu3 %v938_v39  ;;  %1303 = vmatpush.msra.mxu2 %v938_v39 }
 0xa0f   :  { %v781_v2 = vrot.slane %v780_v1, 1  ;;  %1180 = vmatpush.msrb.mxu0 %v937_v40 }
 0xa10   :  { %1242 = vmatpush.msra.mxu3 %v937_v40  ;;  %1304 = vmatpush.msra.mxu2 %v937_v40 }
 0xa11   :  { %v782_v5 = vadd.f32 %v781_v2, %v780_v1  ;;  %1181 = vmatpush.msrb.mxu0 %v936_v41 }
 0xa12   :  { %1243 = vmatpush.msra.mxu3 %v936_v41  ;;  %1305 = vmatpush.msra.mxu2 %v936_v41 }
 0xa71   :  { %v836_v6 = vpop.permute.xlu1 %835 }
 0xa72   :  { %v1983_v7 = vsel %vm838_vm0, %v782_v5, %v836_v6 }
 0xa73   :  { %v845_v17 = vmul.f32 %v1645_v4, %v1983_v7 }
 0xa75   :  { %v847_v0 = vsel %vm846_vm1, %v845_v17, 0.0 }
 0xa76   :  { %848 = vadd.xlane.f32.xlu1 %v847_v0 }
 0xa79   :  { %v859_v8 = vpop.permute.xlu1 %858 }
 0xa7a   :  { %v1987_v9 = vsel %vm861_vm2, %v856_v63, %v859_v8 }
 0xa7b   :  { %v863_v10 = vperm.slane %v1987_v9, 0  ;;  %v870_v37 = vperm.slane %v1987_v9, 1  ;;  %v877_v8 = vperm.slane %v1987_v9, 2 }
 0xa7d   :  { %868 = vperm.xlu2 %1638, %v863_v10   ;;  %v884_v10 = vperm.slane %v1987_v9, 3 }
 0xad7   :  { %v869_v13 = vpop.permute.xlu2 %868 }
 0xad8   :  { %v920_v19 = vmul.f32 %v1990_v12, %v869_v13 }
 0xae9   :  { %v849_v14 = vpop.xlane.xlu1 %848 }
 0xaea   :  { %v851_v18 = vmul.f32 %v1647_v11, %v849_v14 }
 0xaec   :  { %v1993_v47 = vadd.f32 %v1648_v46, %v851_v18 }
 0xaee   :  { %v928_v20 = vadd.f32 %v920_v19, %v1993_v47 }
 0xaf0   :  { %1658 = vtanh.f32 %v928_v20  ;;  %v1485_v22 = vmul.f32 -1.442695, %v928_v20 }
 0xaf2   :  { %1660 = vpow2.f32 %v1485_v22 }
 0xaf6   :  { %v1659_v21 = vpop.eup %1658 }
 0xaf7   :  { %961 = vrot.lane.b32.xlu0 %v1659_v21, %s1814_s24 }
 0xaf8   :  { %v1661_v23 = vpop.eup %1660 }
 0xaf9   :  { %v943_v57 = vadd.f32 1.0, %v1661_v23 }
 0xafb   :  { %1662 = vrcp.f32 %v943_v57  ;;  %v955_v28 = vand.u32 2147483648, %v943_v57  ;;  %vm949_vm5 = vweird.f32 %v943_v57  ;;  %v953_v29 = vand.u32 2147483647, %v943_v57 }
 0xafd   :  { %v956_v33 = vor.u32 1.1754944e-38, %v955_v28  ;;  %vm954_vm7 = vcmp.eq.f32.partialorder %v953_v29, 8.507059e+37 }
 0xb01   :  { %v1663_v58 = vpop.eup %1662 }
 0xb02   :  { %v945_v24 = vmul.f32 %v1663_v58, %v943_v57  ;;  %vm950_vm3 = vweird.f32 %v1663_v58 }
 0xb03   :  { %vm951_vm6 = vmor %vm949_vm5, %vm950_vm3 }
 0xb04   :  { %v946_v25 = vsub.f32 1.0, %v945_v24 }
 0xb06   :  { %v947_v26 = vmul.f32 %v1663_v58, %v946_v25 }
 0xb08   :  { %v948_v27 = vadd.f32 %v1663_v58, %v947_v26 }
 0xb0a   :  { %v952_v30 = vsel %vm951_vm6, %v1663_v58, %v948_v27 }
 0xb0b   :  { %v957_v34 = vsel %vm954_vm7, %v956_v33, %v952_v30 }
 0xb69   :  { %v962_v3 = vpop.permute.xlu0 %961 }
 0xb6a   :  { %v964_v35 = vmul.f32 %v962_v3, %v957_v34 }
 0xb6c   :  { %1664 = vtanh.f32 %v964_v35 }
 0xb72   :  { %v1665_v36 = vpop.eup %1664 }
 0xb73   :  { %967 = vrot.lane.b32.xlu2 %v1665_v36, %s1811_s22 }
 0xb7b   :  { %875 = vperm.xlu2 %1638, %v870_v37  }
 0xbcd   :  { %v968_v42 = vpop.permute.xlu2 %967 }
 0xbce   :  { %v970_v43 = vmul.f32 %v968_v42, %v957_v34 }
 0xbd0   :  { %972 = vrot.lane.b32.xlu0 %v970_v43, %s1816_s26 }
 0xbd5   :  { %v876_v45 = vpop.permute.xlu2 %875 }
 0xbd6   :  { %v921_v48 = vmul.f32 %v1990_v12, %v876_v45 }
 0xbd8   :  { %1017 = vrot.lane.b32.xlu0 %v964_v35, %s1816_s26  ;;  %v929_v49 = vadd.f32 %v921_v48, %v1993_v47 }
 0xc42   :  { %v973_v44 = vpop.permute.xlu0 %972 }
 0xc43   :  { %1486 = vmatmul.msk.f32.vlgmr.msra.gmra.mxu0 %vm712_vm4, %v973_v44 }
 0xc44   :  { %1364 = vmatpush.msra.mxu0 %v939_v38 }
 0xc46   :  { %1365 = vmatpush.msra.mxu0 %v938_v39 }
 0xc48   :  { %1366 = vmatpush.msra.mxu0 %v937_v40 }
 0xc4a   :  { %1367 = vmatpush.msra.mxu0 %v936_v41  ;;  %v1018_v4 = vpop.permute.xlu0 %1017 }
 0xcc0   :  { %v993_v50 = vpop.f32.mrf.mxu0 }
 0xcc1   :  { %v994_v16 = vadd.f32 %v993_v50, %v929_v49 }
 0xcc3   :  { %1666 = vtanh.f32 %v994_v16  ;;  %v1487_v52 = vmul.f32 -1.442695, %v994_v16 }
 0xcc5   :  { %1668 = vpow2.f32 %v1487_v52 }
 0xcc9   :  { %v1667_v51 = vpop.eup %1666 }
 0xcca   :  { %1022 = vrot.lane.b32.xlu1 %v1667_v51, %s1814_s24 }
 0xccb   :  { %v1669_v53 = vpop.eup %1668 }
 0xccc   :  { %v999_v54 = vadd.f32 1.0, %v1669_v53 }
 0xcce   :  { %1670 = vrcp.f32 %v999_v54  ;;  %v1011_v32 = vand.u32 2147483648, %v999_v54  ;;  %vm1005_vm9 = vweird.f32 %v999_v54  ;;  %v1009_v60 = vand.u32 2147483647, %v999_v54 }
 0xcd0   :  { %v1012_v62 = vor.u32 1.1754944e-38, %v1011_v32  ;;  %vm1010_vm11 = vcmp.eq.f32.partialorder %v1009_v60, 8.507059e+37 }
 0xcd4   :  { %v1671_v55 = vpop.eup %1670 }
 0xcd5   :  { %v1001_v56 = vmul.f32 %v1671_v55, %v999_v54  ;;  %vm1006_vm8 = vweird.f32 %v1671_v55 }
 0xcd6   :  { %vm1007_vm10 = vmor %vm1005_vm9, %vm1006_vm8 }
 0xcd7   :  { %v1002_v59 = vsub.f32 1.0, %v1001_v56 }
 0xcd9   :  { %v1003_v15 = vmul.f32 %v1671_v55, %v1002_v59 }
 0xcdb   :  { %v1004_v31 = vadd.f32 %v1671_v55, %v1003_v15 }
 0xcdd   :  { %v1008_v61 = vsel %vm1007_vm10, %v1671_v55, %v1004_v31 }
 0xcde   :  { %v1013_v1 = vsel %vm1010_vm11, %v1012_v62, %v1008_v61 }
 0xcdf   :  { %v1020_v5 = vmul.f32 %v1018_v4, %v1013_v1 }
 0xd3c   :  { %v1023_v63 = vpop.permute.xlu1 %1022 }
 0xd3d   :  { %v1025_v2 = vmul.f32 %v1023_v63, %v1013_v1 }
 0xd3f   :  { %1027 = vrot.lane.b32.xlu2 %v1025_v2, %s1816_s26  ;;  %v891_v2 = vperm.slane %v1987_v9, 4 }
 0xd99   :  { %v1028_v6 = vpop.permute.xlu2 %1027 }
 0xd9a   :  { %v1030_v17 = vadd.f32 %v1028_v6, %v1020_v5 }
 0xd9c   :  { %1672 = vtanh.f32 %v1030_v17 }
 0xda2   :  { %v1673_v0 = vpop.eup %1672 }
 0xda3   :  { %1033 = vrot.lane.b32.xlu0 %v1673_v0, %s1814_s24 }
 0xdab   :  { %882 = vperm.xlu0 %1639, %v877_v8  }
 0xdb3   :  { %889 = vperm.xlu0 %1639, %v884_v10  }
 0xe15   :  { %v1034_v11 = vpop.permute.xlu0 %1033 }
 0xe16   :  { %v1036_v46 = vmul.f32 %v1034_v11, %v1013_v1 }
 0xe18   :  { %1038 = vrot.lane.b32.xlu2 %v1036_v46, %s1816_s26 }
 0xe1d   :  { %v883_v14 = vpop.permute.xlu0 %882 }
 0xe1e   :  { %v922_v18 = vmul.f32 %v1990_v12, %v883_v14 }
 0xe20   :  { %v930_v19 = vadd.f32 %v922_v18, %v1993_v47 }
 0xe25   :  { %v890_v44 = vpop.permute.xlu0 %889 }
 0xe26   :  { %v923_v45 = vmul.f32 %v1990_v12, %v890_v44 }
 0xe28   :  { %v931_v48 = vadd.f32 %v923_v45, %v1993_v47 }
 0xe72   :  { %v1039_v13 = vpop.permute.xlu2 %1038 }
 0xe73   :  { %1488 = vmatmul.msk.f32.vlgmr.msrb.gmra.mxu3 %vm712_vm4, %v1039_v13 }
 0xef6   :  { %v1059_v20 = vpop.f32.mrf.mxu3 }
 0xef7   :  { %v1060_v21 = vadd.f32 %v1059_v20, %v930_v19 }
 0xef9   :  { %1674 = vtanh.f32 %v1060_v21  ;;  %v1489_v23 = vmul.f32 -1.442695, %v1060_v21 }
 0xefb   :  { %1676 = vpow2.f32 %v1489_v23 }
 0xeff   :  { %v1675_v22 = vpop.eup %1674 }
 0xf00   :  { %1084 = vrot.lane.b32.xlu2 %v1675_v22, %s1814_s24 }
 0xf01   :  { %v1677_v57 = vpop.eup %1676 }
 0xf02   :  { %v1065_v58 = vadd.f32 1.0, %v1677_v57 }
 0xf04   :  { %1678 = vrcp.f32 %v1065_v58  ;;  %v1077_v29 = vand.u32 2147483648, %v1065_v58  ;;  %vm1071_vm13 = vweird.f32 %v1065_v58  ;;  %v1075_v30 = vand.u32 2147483647, %v1065_v58 }
 0xf06   :  { %v1078_v3 = vor.u32 1.1754944e-38, %v1077_v29  ;;  %vm1076_vm15 = vcmp.eq.f32.partialorder %v1075_v30, 8.507059e+37 }
 0xf0a   :  { %v1679_v24 = vpop.eup %1678 }
 0xf0b   :  { %v1067_v25 = vmul.f32 %v1679_v24, %v1065_v58  ;;  %vm1072_vm12 = vweird.f32 %v1679_v24 }
 0xf0c   :  { %vm1073_vm14 = vmor %vm1071_vm13, %vm1072_vm12 }
 0xf0d   :  { %v1068_v26 = vsub.f32 1.0, %v1067_v25 }
 0xf0f   :  { %v1069_v27 = vmul.f32 %v1679_v24, %v1068_v26 }
 0xf11   :  { %v1070_v28 = vadd.f32 %v1679_v24, %v1069_v27 }
 0xf13   :  { %v1074_v33 = vsel %vm1073_vm14, %v1679_v24, %v1070_v28 }
 0xf14   :  { %v1079_v35 = vsel %vm1076_vm15, %v1078_v3, %v1074_v33 }
 0xf15   :  { %v1082_v37 = vmul.f32 %v1079_v35, %v1030_v17 }
 0xf5a   :  { %v1085_v34 = vpop.permute.xlu2 %1084 }
 0xf5b   :  { %v1087_v36 = vmul.f32 %v1085_v34, %v1079_v35  ;;  %v898_v34 = vperm.slane %v1987_v9, 5 }
 0xf5d   :  { %1089 = vrot.lane.b32.xlu1 %v1087_v36, %s1816_s26 }
 0xfcf   :  { %v1090_v38 = vpop.permute.xlu1 %1089 }
 0xfd0   :  { %v1092_v39 = vadd.f32 %v1090_v38, %v1082_v37 }
 0xfd2   :  { %1680 = vtanh.f32 %v1092_v39 }
 0xfd8   :  { %v1681_v40 = vpop.eup %1680 }
 0xfd9   :  { %1095 = vrot.lane.b32.xlu2 %v1681_v40, %s1814_s24 }
0x1033   :  { %v1096_v41 = vpop.permute.xlu2 %1095 }
0x1034   :  { %v1098_v42 = vmul.f32 %v1096_v41, %v1079_v35 }
0x1036   :  { %1100 = vrot.lane.b32.xlu1 %v1098_v42, %s1816_s26 }
0x10a8   :  { %v1101_v43 = vpop.permute.xlu1 %1100 }
0x10a9   :  { %1490 = vmatmul.msk.f32.vlgmr.msrb.gmra.mxu2 %vm712_vm4, %v1101_v43 }
0x112c   :  { %v1121_v49 = vpop.f32.mrf.mxu2 }
0x112d   :  { %v1122_v50 = vadd.f32 %v1121_v49, %v931_v48 }
0x112f   :  { %1682 = vtanh.f32 %v1122_v50  ;;  %v1491_v51 = vmul.f32 -1.442695, %v1122_v50 }
0x1131   :  { %1684 = vpow2.f32 %v1491_v51 }
0x1135   :  { %v1683_v16 = vpop.eup %1682 }
0x1136   :  { %1146 = vrot.lane.b32.xlu2 %v1683_v16, %s1814_s24 }
0x1137   :  { %v1685_v52 = vpop.eup %1684 }
0x1138   :  { %v1127_v53 = vadd.f32 1.0, %v1685_v52 }
0x113a   :  { %1686 = vrcp.f32 %v1127_v53  ;;  %v1139_v31 = vand.u32 2147483648, %v1127_v53  ;;  %vm1133_vm2 = vweird.f32 %v1127_v53  ;;  %v1137_v32 = vand.u32 2147483647, %v1127_v53 }
0x113c   :  { %v1140_v61 = vor.u32 1.1754944e-38, %v1139_v31  ;;  %vm1138_vm5 = vcmp.eq.f32.partialorder %v1137_v32, 8.507059e+37 }
0x1140   :  { %v1687_v54 = vpop.eup %1686 }
0x1141   :  { %v1129_v55 = vmul.f32 %v1687_v54, %v1127_v53  ;;  %vm1134_vm0 = vweird.f32 %v1687_v54 }
0x1142   :  { %vm1135_vm3 = vmor %vm1133_vm2, %vm1134_vm0 }
0x1143   :  { %v1130_v56 = vsub.f32 1.0, %v1129_v55 }
0x1145   :  { %v1131_v59 = vmul.f32 %v1687_v54, %v1130_v56 }
0x1147   :  { %v1132_v15 = vadd.f32 %v1687_v54, %v1131_v59 }
0x1149   :  { %v1136_v60 = vsel %vm1135_vm3, %v1687_v54, %v1132_v15 }
0x114a   :  { %v1141_v63 = vsel %vm1138_vm5, %v1140_v61, %v1136_v60 }
0x114b   :  { %v1144_v4 = vmul.f32 %v1141_v63, %v1092_v39 }
0x1190   :  { %v1147_v62 = vpop.permute.xlu2 %1146 }
0x1191   :  { %v1149_v1 = vmul.f32 %v1147_v62, %v1141_v63 }
0x1193   :  { %1151 = vrot.lane.b32.xlu1 %v1149_v1, %s1816_s26 }
0x119b   :  { %896 = vperm.xlu1 %1640, %v891_v2  }
0x1205   :  { %v1152_v5 = vpop.permute.xlu1 %1151 }
0x1206   :  { %v1154_v6 = vadd.f32 %v1152_v5, %v1144_v4 }
0x1208   :  { %1688 = vtanh.f32 %v1154_v6 }
0x120d   :  { %v897_v11 = vpop.permute.xlu1 %896 }
0x120e   :  { %v1689_v17 = vpop.eup %1688  ;;  %v924_v46 = vmul.f32 %v1990_v12, %v897_v11 }
0x120f   :  { %1157 = vrot.lane.b32.xlu0 %v1689_v17, %s1814_s24 }
0x1210   :  { %v932_v13 = vadd.f32 %v924_v46, %v1993_v47 }
0x1281   :  { %v1158_v0 = vpop.permute.xlu0 %1157 }
0x1282   :  { %v1160_v8 = vmul.f32 %v1158_v0, %v1141_v63  ;;  %v905_v63 = vperm.slane %v1987_v9, 6 }
0x1284   :  { %1162 = vrot.lane.b32.xlu2 %v1160_v8, %s1816_s26 }
0x12de   :  { %v1163_v10 = vpop.permute.xlu2 %1162 }
0x12df   :  { %1492 = vmatmul.msk.f32.vlgmr.msrb.gmra.mxu0 %vm712_vm4, %v1163_v10 }
0x135c   :  { %v1183_v14 = vpop.f32.mrf.mxu0 }
0x135d   :  { %v1184_v18 = vadd.f32 %v1183_v14, %v932_v13 }
0x135f   :  { %1690 = vtanh.f32 %v1184_v18  ;;  %v1493_v20 = vmul.f32 -1.442695, %v1184_v18 }
0x1361   :  { %1692 = vpow2.f32 %v1493_v20 }
0x1365   :  { %v1691_v19 = vpop.eup %1690 }
0x1366   :  { %1208 = vrot.lane.b32.xlu0 %v1691_v19, %s1814_s24 }
0x1367   :  { %v1693_v21 = vpop.eup %1692 }
0x1368   :  { %v1189_v22 = vadd.f32 1.0, %v1693_v21 }
0x136a   :  { %1694 = vrcp.f32 %v1189_v22  ;;  %v1201_v26 = vand.u32 2147483648, %v1189_v22  ;;  %vm1195_vm7 = vweird.f32 %v1189_v22  ;;  %v1199_v27 = vand.u32 2147483647, %v1189_v22 }
0x136c   :  { %v1202_v29 = vor.u32 1.1754944e-38, %v1201_v26  ;;  %vm1200_vm9 = vcmp.eq.f32.partialorder %v1199_v27, 8.507059e+37 }
0x1370   :  { %v1695_v23 = vpop.eup %1694 }
0x1371   :  { %v1191_v57 = vmul.f32 %v1695_v23, %v1189_v22  ;;  %vm1196_vm6 = vweird.f32 %v1695_v23 }
0x1372   :  { %vm1197_vm8 = vmor %vm1195_vm7, %vm1196_vm6  ;;  %vm1420_vm7 = vcmask 254976  }
0x1373   :  { %v1192_v58 = vsub.f32 1.0, %v1191_v57 }
0x1375   :  { %v1193_v24 = vmul.f32 %v1695_v23, %v1192_v58 }
0x1377   :  { %v1194_v25 = vadd.f32 %v1695_v23, %v1193_v24 }
0x1379   :  { %v1198_v28 = vsel %vm1197_vm8, %v1695_v23, %v1194_v25 }
0x137a   :  { %v1203_v33 = vsel %vm1200_vm9, %v1202_v29, %v1198_v28 }
0x137b   :  { %v1206_v35 = vmul.f32 %v1203_v33, %v1154_v6 }
0x13d8   :  { %v1209_v30 = vpop.permute.xlu0 %1208 }
0x13d9   :  { %v1211_v3 = vmul.f32 %v1209_v30, %v1203_v33 }
0x13db   :  { %1213 = vrot.lane.b32.xlu2 %v1211_v3, %s1816_s26 }
0x13e3   :  { %903 = vperm.xlu2 %1638, %v898_v34  }
0x1435   :  { %v1214_v36 = vpop.permute.xlu2 %1213 }
0x1436   :  { %v1216_v37 = vadd.f32 %v1214_v36, %v1206_v35 }
0x1438   :  { %1696 = vtanh.f32 %v1216_v37 }
0x143d   :  { %v904_v42 = vpop.permute.xlu2 %903 }
0x143e   :  { %v1697_v38 = vpop.eup %1696  ;;  %v925_v43 = vmul.f32 %v1990_v12, %v904_v42 }
0x143f   :  { %1219 = vrot.lane.b32.xlu1 %v1697_v38, %s1814_s24 }
0x1440   :  { %v933_v44 = vadd.f32 %v925_v43, %v1993_v47 }
0x14b1   :  { %v1220_v39 = vpop.permute.xlu1 %1219 }
0x14b2   :  { %v1222_v40 = vmul.f32 %v1220_v39, %v1203_v33  ;;  %v912_v33 = vperm.slane %v1987_v9, 7 }
0x14b4   :  { %1224 = vrot.lane.b32.xlu0 %v1222_v40, %s1816_s26 }
0x1526   :  { %v1225_v41 = vpop.permute.xlu0 %1224 }
0x1527   :  { %1494 = vmatmul.msk.f32.vlgmr.msra.gmra.mxu3 %vm712_vm4, %v1225_v41 }
0x15aa   :  { %v1245_v45 = vpop.f32.mrf.mxu3 }
0x15ab   :  { %v1246_v48 = vadd.f32 %v1245_v45, %v933_v44  ;;  %v1649_v45 = vld [vmem:[#allocation5 + $0x11d] ss:$0 sm:$0xff] }
0x15ad   :  { %1698 = vtanh.f32 %v1246_v48  ;;  %v1495_v50 = vmul.f32 -1.442695, %v1246_v48 }
0x15af   :  { %1700 = vpow2.f32 %v1495_v50 }
0x15b3   :  { %v1699_v49 = vpop.eup %1698 }
0x15b4   :  { %1270 = vrot.lane.b32.xlu1 %v1699_v49, %s1814_s24 }
0x15b5   :  { %v1701_v16 = vpop.eup %1700 }
0x15b6   :  { %v1251_v51 = vadd.f32 1.0, %v1701_v16 }
0x15b8   :  { %1702 = vrcp.f32 %v1251_v51  ;;  %v1263_v59 = vand.u32 2147483648, %v1251_v51  ;;  %vm1257_vm11 = vweird.f32 %v1251_v51  ;;  %v1261_v15 = vand.u32 2147483647, %v1251_v51 }
0x15ba   :  { %v1264_v32 = vor.u32 1.1754944e-38, %v1263_v59  ;;  %vm1262_vm13 = vcmp.eq.f32.partialorder %v1261_v15, 8.507059e+37 }
0x15be   :  { %v1703_v52 = vpop.eup %1702 }
0x15bf   :  { %v1253_v53 = vmul.f32 %v1703_v52, %v1251_v51  ;;  %vm1258_vm10 = vweird.f32 %v1703_v52 }
0x15c0   :  { %vm1259_vm12 = vmor %vm1257_vm11, %vm1258_vm10 }
0x15c1   :  { %v1254_v54 = vsub.f32 1.0, %v1253_v53 }
0x15c3   :  { %v1255_v55 = vmul.f32 %v1703_v52, %v1254_v54 }
0x15c5   :  { %v1256_v56 = vadd.f32 %v1703_v52, %v1255_v55 }
0x15c7   :  { %v1260_v31 = vsel %vm1259_vm12, %v1703_v52, %v1256_v56 }
0x15c8   :  { %v1265_v61 = vsel %vm1262_vm13, %v1264_v32, %v1260_v31 }
0x15c9   :  { %v1268_v1 = vmul.f32 %v1265_v61, %v1216_v37 }
0x1626   :  { %v1271_v60 = vpop.permute.xlu1 %1270 }
0x1627   :  { %v1273_v62 = vmul.f32 %v1271_v60, %v1265_v61 }
0x1629   :  { %1275 = vrot.lane.b32.xlu0 %v1273_v62, %s1816_s26 }
0x1631   :  { %910 = vperm.xlu0 %1639, %v905_v63  }
0x169b   :  { %v1276_v2 = vpop.permute.xlu0 %1275 }
0x169c   :  { %v1278_v4 = vadd.f32 %v1276_v2, %v1268_v1 }
0x169e   :  { %1704 = vtanh.f32 %v1278_v4 }
0x16a3   :  { %v911_v8 = vpop.permute.xlu0 %910 }
0x16a4   :  { %v1705_v5 = vpop.eup %1704  ;;  %v926_v10 = vmul.f32 %v1990_v12, %v911_v8 }
0x16a5   :  { %1281 = vrot.lane.b32.xlu2 %v1705_v5, %s1814_s24 }
0x16a6   :  { %v934_v11 = vadd.f32 %v926_v10, %v1993_v47 }
0x16ff   :  { %v1282_v6 = vpop.permute.xlu2 %1281 }
0x1700   :  { %v1284_v17 = vmul.f32 %v1282_v6, %v1265_v61 }
0x1702   :  { %1286 = vrot.lane.b32.xlu1 %v1284_v17, %s1816_s26 }
0x1774   :  { %v1287_v0 = vpop.permute.xlu1 %1286 }
0x1775   :  { %1496 = vmatmul.msk.f32.vlgmr.msra.gmra.mxu2 %vm712_vm4, %v1287_v0 }
0x17f8   :  { %v1307_v46 = vpop.f32.mrf.mxu2 }
0x17f9   :  { %v1308_v13 = vadd.f32 %v1307_v46, %v934_v11 }
0x17fb   :  { %1706 = vtanh.f32 %v1308_v13  ;;  %v1497_v18 = vmul.f32 -1.442695, %v1308_v13 }
0x17fd   :  { %1708 = vpow2.f32 %v1497_v18 }
0x1801   :  { %v1707_v14 = vpop.eup %1706 }
0x1802   :  { %1332 = vrot.lane.b32.xlu2 %v1707_v14, %s1814_s24 }
0x1803   :  { %v1709_v19 = vpop.eup %1708 }
0x1804   :  { %v1313_v20 = vadd.f32 1.0, %v1709_v19 }
0x1806   :  { %1710 = vrcp.f32 %v1313_v20  ;;  %v1325_v24 = vand.u32 2147483648, %v1313_v20  ;;  %vm1319_vm15 = vweird.f32 %v1313_v20  ;;  %v1323_v25 = vand.u32 2147483647, %v1313_v20 }
0x1808   :  { %v1326_v27 = vor.u32 1.1754944e-38, %v1325_v24  ;;  %vm1324_vm2 = vcmp.eq.f32.partialorder %v1323_v25, 8.507059e+37 }
0x180c   :  { %v1711_v21 = vpop.eup %1710 }
0x180d   :  { %v1315_v22 = vmul.f32 %v1711_v21, %v1313_v20  ;;  %vm1320_vm14 = vweird.f32 %v1711_v21 }
0x180e   :  { %vm1321_vm0 = vmor %vm1319_vm15, %vm1320_vm14 }
0x180f   :  { %v1316_v23 = vsub.f32 1.0, %v1315_v22 }
0x1811   :  { %v1317_v57 = vmul.f32 %v1711_v21, %v1316_v23 }
0x1813   :  { %v1318_v58 = vadd.f32 %v1711_v21, %v1317_v57 }
0x1815   :  { %v1322_v26 = vsel %vm1321_vm0, %v1711_v21, %v1318_v58 }
0x1816   :  { %v1327_v29 = vsel %vm1324_vm2, %v1326_v27, %v1322_v26 }
0x1817   :  { %v1330_v3 = vmul.f32 %v1327_v29, %v1278_v4 }
0x185c   :  { %v1333_v28 = vpop.permute.xlu2 %1332 }
0x185d   :  { %v1335_v30 = vmul.f32 %v1333_v28, %v1327_v29 }
0x185f   :  { %1337 = vrot.lane.b32.xlu1 %v1335_v30, %s1816_s26 }
0x1867   :  { %917 = vperm.xlu1 %1640, %v912_v33  }
0x18d1   :  { %v1338_v34 = vpop.permute.xlu1 %1337 }
0x18d2   :  { %v1340_v35 = vadd.f32 %v1338_v34, %v1330_v3 }
0x18d4   :  { %1712 = vtanh.f32 %v1340_v35 }
0x18d9   :  { %v918_v40 = vpop.permute.xlu1 %917 }
0x18da   :  { %v1713_v36 = vpop.eup %1712  ;;  %v927_v41 = vmul.f32 %v1990_v12, %v918_v40 }
0x18db   :  { %1343 = vrot.lane.b32.xlu0 %v1713_v36, %s1814_s24 }
0x18dc   :  { %v935_v9 = vadd.f32 %v927_v41, %v1993_v47 }
0x194d   :  { %v1344_v37 = vpop.permute.xlu0 %1343 }
0x194e   :  { %v1346_v38 = vmul.f32 %v1344_v37, %v1327_v29 }
0x1950   :  { %1348 = vrot.lane.b32.xlu2 %v1346_v38, %s1816_s26 }
0x19aa   :  { %v1349_v39 = vpop.permute.xlu2 %1348 }
0x19ab   :  { %1498 = vmatmul.msk.f32.vlgmr.msra.gmra.mxu0 %vm712_vm4, %v1349_v39 }
0x1a28   :  { %v1369_v42 = vpop.f32.mrf.mxu0 }
0x1a29   :  { %v1370_v43 = vadd.f32 %v1369_v42, %v935_v9 }
0x1a2b   :  { %1714 = vtanh.f32 %v1370_v43  ;;  %v1499_v48 = vmul.f32 -1.442695, %v1370_v43 }
0x1a2d   :  { %1716 = vpow2.f32 %v1499_v48 }
0x1a31   :  { %v1715_v44 = vpop.eup %1714 }
0x1a32   :  { %1394 = vrot.lane.b32.xlu0 %v1715_v44, %s1814_s24 }
0x1a33   :  { %v1717_v49 = vpop.eup %1716 }
0x1a34   :  { %v1375_v50 = vadd.f32 1.0, %v1717_v49 }
0x1a36   :  { %1718 = vrcp.f32 %v1375_v50  ;;  %v1387_v47 = vand.u32 2147483648, %v1375_v50  ;;  %vm1381_vm3 = vweird.f32 %v1375_v50  ;;  %v1385_v54 = vand.u32 2147483647, %v1375_v50 }
0x1a38   :  { %v1388_v56 = vor.u32 1.1754944e-38, %v1387_v47  ;;  %vm1386_vm6 = vcmp.eq.f32.partialorder %v1385_v54, 8.507059e+37 }
0x1a3a   :  { %1412 = vrot.lane.b32.xlu0 %v1649_v45, %s1811_s22 }
0x1a3c   :  { %v1719_v16 = vpop.eup %1718 }
0x1a3d   :  { %v1377_v51 = vmul.f32 %v1719_v16, %v1375_v50  ;;  %vm1382_vm4 = vweird.f32 %v1719_v16 }
0x1a3e   :  { %vm1383_vm5 = vmor %vm1381_vm3, %vm1382_vm4 }
0x1a3f   :  { %v1378_v52 = vsub.f32 1.0, %v1377_v51 }
0x1a41   :  { %v1379_v12 = vmul.f32 %v1719_v16, %v1378_v52 }
0x1a43   :  { %v1380_v53 = vadd.f32 %v1719_v16, %v1379_v12 }
0x1a45   :  { %v1384_v55 = vsel %vm1383_vm5, %v1719_v16, %v1380_v53 }
0x1a46   :  { %v1389_v15 = vsel %vm1386_vm6, %v1388_v56, %v1384_v55 }
0x1a47   :  { %v1392_v62 = vmul.f32 %v1389_v15, %v1340_v35 }
0x1aa4   :  { %v1395_v59 = vpop.permute.xlu0 %1394 }
0x1aa5   :  { %v1397_v31 = vmul.f32 %v1395_v59, %v1389_v15 }
0x1aa7   :  { %1399 = vrot.lane.b32.xlu2 %v1397_v31, %s1816_s26 }
0x1aac   :  { %v1413_v32 = vpop.permute.xlu0 %1412 }
0x1aad   :  { %v1424_v60 = vmul.f32 %v1413_v32, %v1983_v7  ;;  %v1817_v7 = vmov 47  }
0x1aae   :  { %1641 = vset.pattern.permute.xlu2 %v1817_v7  ;;  %1642 = vset.pattern.permute.xlu0 %v1817_v7 }
0x1aaf   :  { %v1425_v61 = vsel %vm846_vm1, %v1424_v60, 0.0 }
0x1ab0   :  { %1426 = vadd.xlane.f32.xlu0 %v1425_v61 }
0x1b01   :  { %v1400_v63 = vpop.permute.xlu2 %1399 }
0x1b02   :  { %v1402_v1 = vadd.f32 %v1400_v63, %v1392_v62 }
0x1b04   :  { %1720 = vtanh.f32 %v1402_v1 }
0x1b0a   :  { %v1721_v2 = vpop.eup %1720 }
0x1b0b   :  { %1405 = vrot.lane.b32.xlu1 %v1721_v2, %s1814_s24 }
0x1b23   :  { %v1427_v8 = vpop.xlane.xlu0 %1426 }
0x1b7d   :  { %v1406_v4 = vpop.permute.xlu1 %1405 }
0x1b7e   :  { %v1408_v5 = vmul.f32 %v1406_v4, %v1389_v15 }
0x1b80   :  { %v1415_v6 = vmul.f32 %v1413_v32, %v1408_v5 }
0x1b82   :  { %1417 = vrot.lane.b32.xlu2 %v1415_v6, %s1816_s26 }
0x1bdc   :  { %v1418_v17 = vpop.permute.xlu2 %1417 }
0x1bdd   :  { %v1421_v0 = vsel %vm1420_vm7, %v1418_v17, 0.0 }
0x1bde   :  { %1422 = vadd.xlane.f32.xlu1 %v1421_v0 }
0x1c51   :  { %v1423_v10 = vpop.xlane.xlu1 %1422 }
0x1c52   :  { %v1428_v11 = vadd.f32 %v1427_v8, %v1423_v10 }
0x1c54   :  { %v1429_v46 = vadd.f32 %v1649_v45, %v1428_v11 }
0x1c56   :  { %1432 = vperm.xlu2 %1641, %v1429_v46  }
0x1cb0   :  { %v1433_v13 = vpop.permute.xlu2 %1432 }
0x1cb1   :  { %1435 = vst [vmem:[#allocation7] sm:$0x3] %v1433_v13 }
0x1cb2   :  { %1446 = dma.vmem_to_hbm [thread:$0]  %s1442_s28, 32, %s1444_s3, [#allocation4]  }
0x1cb3   :  { %1799 = dma.done.wait [#allocation4], 32  }
0x1cb4   :  { %1800 = vsyncadd [#allocation4], 4294967264 }
0x1cb5   :  { %1451 = vsyncpa [#allocation3], 1 }
0x1cb6   :  { %1452 = vsyncpa [#allocation6], 1 }
0x1cb7   :  { %1453 = vsyncpa [#allocation4], 1 }

</bundles_post_ra>
